<compile_context>
chip_gen: v7x
topology: tpu7x:2x2x1
jax: 0.10.0
libtpu: 0.0.40
codegen_flags: <defaults>
</compile_context>

<pallas_src>
import jax
import jax.numpy as jnp
from jax import lax
from jax.experimental import pallas as pl
from jax.experimental.pallas import tpu as pltpu


def _round_up(x, m):
    return ((x + m - 1) // m) * m


def _acil_kernel(x_ref, w1_ref, w2_ref, o_ref):
    k = pl.program_id(1)  # sequential reduction step within this split

    # Feature expansion for this buffer tile: relu(Xf @ W1_tile.T).
    # Contract axis 1 of both operands (W1 kept in torch (Buf, D) layout).
    # ReLU is applied on the f32 MXU output (v5e has no bf16 VPU).
    h = lax.dot_general(
        x_ref[...], w1_ref[...],
        dimension_numbers=(((1,), (1,)), ((), ())),
        preferred_element_type=jnp.float32,
    )
    h = jnp.maximum(h, 0.0).astype(jnp.bfloat16)

    # Analytic-linear contribution of this buffer tile (bf16 in, f32 acc).
    contrib = jnp.dot(h, w2_ref[...], preferred_element_type=jnp.float32)

    # Output block index is constant across k, so it stays resident in VMEM:
    # accumulate directly into it.
    @pl.when(k == 0)
    def _():
        o_ref[...] = contrib

    @pl.when(k > 0)
    def _():
        o_ref[...] += contrib


def acil_forward(x_nchw, w_buffer, w_analytic, *, buf_tile=512, num_splits=2):
    """Runs ACIL.forward.

    x_nchw     : (B, C, H, W)            float-ish
    w_buffer   : (buffer_size, D)        torch.nn.Linear weight layout (Buf, D)
    w_analytic : (buffer_size, num_cls)  analytic linear weight
    returns    : (B, num_cls)            float32
    """
    B = x_nchw.shape[0]
    D = 1
    for s in x_nchw.shape[1:]:
        D *= s
    Buf, Dw = w_buffer.shape
    assert Dw == D
    Buf2, C_out = w_analytic.shape
    assert Buf2 == Buf

    # Padded (aligned) sizes: B -> sublane (8), D / C_out -> lane (128),
    # Buf -> multiple of the buffer tile.
    Bpad = _round_up(max(B, 8), 8)
    Dpad = _round_up(D, 128)
    Cpad = _round_up(max(C_out, 128), 128)
    buf_tile = min(buf_tile, _round_up(Buf, 8))
    Bufpad = _round_up(Buf, buf_tile)

    total_tiles = Bufpad // buf_tile
    if total_tiles % num_splits != 0:
        num_splits = 1
    steps = total_tiles // num_splits

    # Glue: flatten (torch.nn.Flatten) + dtype cast + zero padding.
    # Zero-padded buffer rows yield relu(0)=0 features -> contribute nothing.
    xf = x_nchw.reshape(B, D).astype(jnp.bfloat16)
    if (Bpad, Dpad) != (B, D):
        xf = jnp.pad(xf, ((0, Bpad - B), (0, Dpad - D)))
    w1 = w_buffer.astype(jnp.bfloat16)
    if (Bufpad, Dpad) != (Buf, D):
        w1 = jnp.pad(w1, ((0, Bufpad - Buf), (0, Dpad - D)))
    w2 = w_analytic.astype(jnp.bfloat16)
    if (Bufpad, Cpad) != (Buf, C_out):
        w2 = jnp.pad(w2, ((0, Bufpad - Buf), (0, Cpad - C_out)))

    partials = pl.pallas_call(
        _acil_kernel,
        out_shape=jax.ShapeDtypeStruct((num_splits, Bpad, Cpad), jnp.float32),
        grid=(num_splits, steps),
        in_specs=[
            # Xf stays resident across the whole grid (tiny).
            pl.BlockSpec((Bpad, Dpad), lambda s, k: (0, 0)),
            # W1 tile: (buf_tile, Dpad) block along the buffer dim.
            pl.BlockSpec((buf_tile, Dpad), lambda s, k: (s * steps + k, 0)),
            # W2 tile: matching (buf_tile, Cpad) block.
            pl.BlockSpec((buf_tile, Cpad), lambda s, k: (s * steps + k, 0)),
        ],
        # One partial-sum slab per split; resident across the k reduction.
        out_specs=pl.BlockSpec((None, Bpad, Cpad), lambda s, k: (s, 0, 0)),
        compiler_params=pltpu.CompilerParams(
            dimension_semantics=("parallel", "arbitrary"),
        ),
    )(xf, w1, w2)

    # Sum split partials (tiny) and drop the padding.
    return jnp.sum(partials, axis=0)[:B, :C_out]


def _reference_f32(x_nchw, w_buffer, w_analytic):
    B = x_nchw.shape[0]
    xf = x_nchw.reshape(B, -1).astype(jnp.float32)
    h = jnp.maximum(xf @ w_buffer.T.astype(jnp.float32), 0.0)
    return h @ w_analytic.astype(jnp.float32)


def _reference_bf16(x_nchw, w_buffer, w_analytic):
    # Same bf16-operand / f32-accumulation numerics as the kernel.
    B = x_nchw.shape[0]
    xf = x_nchw.reshape(B, -1).astype(jnp.bfloat16)
    h = lax.dot_general(xf, w_buffer.astype(jnp.bfloat16),
                        dimension_numbers=(((1,), (1,)), ((), ())),
                        preferred_element_type=jnp.float32)
    h = jnp.maximum(h, 0.0).astype(jnp.bfloat16)
    return jnp.dot(h, w_analytic.astype(jnp.bfloat16),
                   preferred_element_type=jnp.float32)


if __name__ == "__main__":
    # Small shapes consistent with the module's forward:
    #   input   (B, C, H, W) = (2, 4, 16, 16)  -> backbone_output = 1024
    #   buffer_size = 1024, num_classes = 16
    B, C, H, W = 2, 4, 16, 16
    backbone_output = C * H * W
    buffer_size = 1024
    num_classes = 16

    key = jax.random.PRNGKey(0)
    kx, kb, ka = jax.random.split(key, 3)

    x = jax.random.normal(kx, (B, C, H, W), dtype=jnp.float32)
    # RandomBuffer: frozen random projection (torch.nn.Linear weight layout).
    w_buffer = jax.random.normal(
        kb, (buffer_size, backbone_output), dtype=jnp.float32
    ) * (1.0 / jnp.sqrt(backbone_output))
    # AnalyticLinear weight (deterministic synthetic init).
    w_analytic = jax.random.normal(
        ka, (buffer_size, num_classes), dtype=jnp.float32
    ) * (1.0 / jnp.sqrt(buffer_size))

    out = acil_forward(x, w_buffer, w_analytic)
    out = jax.block_until_ready(out)
    assert out.shape == (B, num_classes)

    # Exact-numerics check (same bf16 operands, f32 accumulation).
    ref_bf16 = _reference_bf16(x, w_buffer, w_analytic)
    assert jnp.allclose(out, ref_bf16, atol=1e-2, rtol=1e-2), \
        "mismatch vs bf16-matched reference"

    # Sanity check against the full-f32 reference (bf16 quantization noise).
    ref_f32 = _reference_f32(x, w_buffer, w_analytic)
    assert jnp.allclose(out, ref_f32, atol=5e-2, rtol=5e-2), \
        "mismatch vs f32 reference"

    print("KERNEL_OK")
</pallas_src>

<mosaic_0001>
module attributes {stable_mosaic.version = 11 : i64} {
  func.func @_acil_kernel(%arg0: i32, %arg1: i32, %arg2: memref<8x1024xbf16, #tpu.memory_space<vmem>>, %arg3: memref<512x1024xbf16, #tpu.memory_space<vmem>>, %arg4: memref<512x128xbf16, #tpu.memory_space<vmem>>, %arg5: memref<1x8x128xf32, #tpu.memory_space<vmem>>) attributes {dimension_semantics = [#tpu.dimension_semantics<parallel>, #tpu.dimension_semantics<arbitrary>], iteration_bounds = array<i64: 2, 1>, scalar_prefetch = 0 : i64, scratch_operands = 0 : i64, tpu.core_type = #tpu.core_type<tc>, window_params = [{pipeline_mode = #tpu.pipeline_mode<synchronous>, transform_indices = @transform_0, window_bounds = array<i64: 8, 1024>}, {transform_indices = @transform_1, window_bounds = array<i64: 512, 1024>}, {transform_indices = @transform_2, window_bounds = array<i64: 512, 128>}, {transform_indices = @transform_3, window_bounds = array<i64: 1, 8, 128>}]} {
    %c0 = arith.constant 0 : index
    %c0_0 = arith.constant 0 : index
    %0 = vector.load %arg2[%c0, %c0_0] : memref<8x1024xbf16, #tpu.memory_space<vmem>>, vector<8x1024xbf16>
    %c0_1 = arith.constant 0 : index
    %c0_2 = arith.constant 0 : index
    %1 = vector.load %arg3[%c0_1, %c0_2] : memref<512x1024xbf16, #tpu.memory_space<vmem>>, vector<512x1024xbf16>
    %cst = arith.constant dense<0.000000e+00> : vector<8x512xf32>
    %2 = tpu.matmul %0, %1, %cst {dimension_numbers = #tpu.dot_dimension_numbers<[1], [1], [0], [0], [0, 0, 1, 0], [], []>} : vector<8x1024xbf16>, vector<512x1024xbf16>, vector<8x512xf32> -> vector<8x512xf32>
    %cst_3 = arith.constant 0.000000e+00 : f32
    %3 = vector.broadcast %cst_3 : f32 to vector<8x512xf32>
    %4 = arith.maximumf %2, %3 : vector<8x512xf32>
    %5 = arith.truncf %4 : vector<8x512xf32> to vector<8x512xbf16>
    %c0_4 = arith.constant 0 : index
    %c0_5 = arith.constant 0 : index
    %6 = vector.load %arg4[%c0_4, %c0_5] : memref<512x128xbf16, #tpu.memory_space<vmem>>, vector<512x128xbf16>
    %cst_6 = arith.constant dense<0.000000e+00> : vector<8x128xf32>
    %7 = tpu.matmul %5, %6, %cst_6 {dimension_numbers = #tpu.dot_dimension_numbers<[1], [0], [0], [1], [0, 0, 1, 1], [], []>} : vector<8x512xbf16>, vector<512x128xbf16>, vector<8x128xf32> -> vector<8x128xf32>
    %c0_i32 = arith.constant 0 : i32
    %8 = arith.cmpi eq, %arg1, %c0_i32 : i32
    %9 = arith.extui %8 : i1 to i32
    %c0_i32_7 = arith.constant 0 : i32
    %10 = arith.cmpi ne, %9, %c0_i32_7 : i32
    scf.if %10 {
      %c0_10 = arith.constant 0 : index
      %c0_11 = arith.constant 0 : index
      %c0_12 = arith.constant 0 : index
      %14 = vector.load %arg5[%c0_10, %c0_11, %c0_12] : memref<1x8x128xf32, #tpu.memory_space<vmem>>, vector<1x8x128xf32>
      %15 = vector.shape_cast %14 : vector<1x8x128xf32> to vector<8x128xf32>
      %16 = vector.shape_cast %7 : vector<8x128xf32> to vector<1x8x128xf32>
      tpu.vector_store %arg5[%c0_10, %c0_11, %c0_12], %16 {strides = array<i32>} : memref<1x8x128xf32, #tpu.memory_space<vmem>>, vector<1x8x128xf32>,
    } else {
    }
    %c0_i32_8 = arith.constant 0 : i32
    %11 = arith.cmpi sgt, %arg1, %c0_i32_8 : i32
    %12 = arith.extui %11 : i1 to i32
    %c0_i32_9 = arith.constant 0 : i32
    %13 = arith.cmpi ne, %12, %c0_i32_9 : i32
    scf.if %13 {
      %c0_10 = arith.constant 0 : index
      %c0_11 = arith.constant 0 : index
      %c0_12 = arith.constant 0 : index
      %14 = vector.load %arg5[%c0_10, %c0_11, %c0_12] : memref<1x8x128xf32, #tpu.memory_space<vmem>>, vector<1x8x128xf32>
      %15 = vector.shape_cast %14 : vector<1x8x128xf32> to vector<8x128xf32>
      %16 = arith.addf %15, %7 : vector<8x128xf32>
      %c0_13 = arith.constant 0 : index
      %c0_14 = arith.constant 0 : index
      %c0_15 = arith.constant 0 : index
      %17 = vector.load %arg5[%c0_13, %c0_14, %c0_15] : memref<1x8x128xf32, #tpu.memory_space<vmem>>, vector<1x8x128xf32>
      %18 = vector.shape_cast %17 : vector<1x8x128xf32> to vector<8x128xf32>
      %19 = vector.shape_cast %16 : vector<8x128xf32> to vector<1x8x128xf32>
      tpu.vector_store %arg5[%c0_13, %c0_14, %c0_15], %19 {strides = array<i32>} : memref<1x8x128xf32, #tpu.memory_space<vmem>>, vector<1x8x128xf32>,
    } else {
    }
    return
  }
  func.func @transform_0(%arg0: i32, %arg1: i32) -> (i32, i32) {
    %c0_i32 = arith.constant 0 : i32
    %c0_i32_0 = arith.constant 0 : i32
    %c0_i32_1 = arith.constant 0 : i32
    return %c0_i32, %c0_i32_0 : i32, i32
  }
  func.func @transform_1(%arg0: i32, %arg1: i32) -> (i32, i32) {
    %c1_i32 = arith.constant 1 : i32
    %0 = arith.muli %arg0, %c1_i32 : i32
    %1 = arith.addi %0, %arg1 : i32
    %c0_i32 = arith.constant 0 : i32
    %c0_i32_0 = arith.constant 0 : i32
    return %1, %c0_i32 : i32, i32
  }
  func.func @transform_2(%arg0: i32, %arg1: i32) -> (i32, i32) {
    %c1_i32 = arith.constant 1 : i32
    %0 = arith.muli %arg0, %c1_i32 : i32
    %1 = arith.addi %0, %arg1 : i32
    %c0_i32 = arith.constant 0 : i32
    %c0_i32_0 = arith.constant 0 : i32
    return %1, %c0_i32 : i32, i32
  }
  func.func @transform_3(%arg0: i32, %arg1: i32) -> (i32, i32, i32) {
    %c0_i32 = arith.constant 0 : i32
    %c0_i32_0 = arith.constant 0 : i32
    %c0_i32_1 = arith.constant 0 : i32
    return %arg0, %c0_i32, %c0_i32_0 : i32, i32, i32
  }
}

</mosaic_0001>

<bundles_post_ra>
// kernel: tpu_custom_call.1
= control target key start
LH: loop header
LB: loop body
LE: loop exit
PB: predicated region body
PF: predicated region fallthrough
CT: control target
= control target key end

     0   :  { %s3927_s0 = inlined_call_operand.hbm [shape: bf16[8,1024], index: 0, kind: input, shape index: {}]   ;;  %s3928_s1 = inlined_call_operand.hbm [shape: bf16[1024,1024], index: 1, kind: input, shape index: {}]   ;;  %s3929_s2 = inlined_call_operand.hbm [shape: bf16[1024,128], index: 2, kind: input, shape index: {}]   ;;  %s3930_s3 = inlined_call_operand.hbm [shape: f32[2,8,128], index: 3, kind: output, shape index: {}]  }
   0x1   :  { %3935 = sst [smem:[#allocation12_spill]] %s3928_s1 }
   0x2   :  { %3936 = sst [smem:[#allocation13_spill]] %s3929_s2 }
   0x3   :  { %8 = vsyncpa [#allocation3], 0 }
   0x4   :  { %9 = vsyncpa [#allocation6], 0 }
   0x5   :  { %11 = vsyncpa [#allocation6 + $0x1], 0 }
   0x6   :  { %12 = vsyncpa [#allocation4], 0 }
   0x7   :  { %14 = vsyncpa [#allocation4 + $0x1], 0  ;;  %s3355_s12 = smov 0   ;;  %s3357_s13 = smov 0  }
   0x8   :  { %s3359_s14 = smov 0   ;;  %s3361_s15 = smov 0  }
   0x9   :  { %s3363_s16 = smov 0   ;;  %s3365_s17 = smov 0  }
   0xa LB: > { %s32_s18 = sadd.s32 1, %s3321_s16  ;;  %s62_s19 = sadd.s32 1, %s3313_s14  ;;  %s3325_s17 = sphi %s3365_s17, %s20_s17   ;;  %s3321_s16 = sphi %s3363_s16, %s3956_s16   ;;  %s3317_s15 = sphi %s3361_s15, %s3955_s15   ;;  %s3313_s14 = sphi %s3359_s14, %s3954_s14   ;;  %s3309_s13 = sphi %s3357_s13, %s3953_s13   ;;  %s3305_s12 = sphi %s3355_s12, %s3952_s12  }
   0xb   : > { %p34_p0 = scmp.ge.s32.totalorder %s32_s18, 2  ;;  %p69_p1 = scmp.ne.s32.totalorder %s3313_s14, %s3309_s13 }
   0xc   : > { %p70_p2 = scmp.eq.s32.totalorder %s3325_s17, 0  ;;  %p3055_p5 = scmp.lt.s32.totalorder %s3325_s17, 2 }
   0xd   : > { %s3958_s18 = smov (%p34_p0, %s32_s18), 0  ;;  %s164_s21 = sand.u32 1, %s3325_s17  }
   0xe   : > { %p71_p4 = por %p70_p2, %p69_p1  ;;  %s59_s20 = ssub.s32 %s3321_s16, %s3958_s18 }
   0xf   : > { %p60_p6 = scmp.eq.s32.totalorder %s59_s20, 0  ;;  %s166_s22 = sand.u32 1, %s3313_s14  }
  0x10   : > { %s2959_s23 = sshll.u32 %s3321_s16, 15  ;;  %s2646_s25 = sshll.u32 %s166_s22, 11 }
  0x11   : > { %s3403_s24 = scalar_select %p60_p6, %s3313_s14, %s62_s19  }
  0x12   : > { %s3937_s1 = sld [smem:[#allocation12_spill]]  ;;  %p3410_p7 = pnand %p3055_p5, %p71_p4 }
  0x13   : > { %s168_s30 = scalar_lea.vmem [#allocation5], %s2646_s25  ;;  %s3416_s5 = sshll.u32 %s166_s22, 8 }
  0x14   : > { %s177_s4 = sshll.u32 %s168_s30, 4  ;;  %s3418_s6 = scalar_lea.sflag [#allocation6], %s164_s21  ;;  %s3414_s4 = int_to_ptr.vmem [resolvable:$true] %s177_s4 }
  0x15   : > { %p3153_p9 = pneg %p3410_p7 }
  0x18   : > { %s3408_s28 = scalar_lea.hbm %s3937_s1, %s2959_s23  ;;  %s3156_s10 = scalar_lea.hbm %s3937_s1, 65536 }
  0x19   : > { %s3151_s7 = scalar_lea.hbm %s3408_s28, 32768  ;;  %p3157_p12 = scmp.lt.u32.totalorder %s3408_s28, %s3937_s1 }
  0x1a   : > { %p3152_p8 = scmp.ne.s32.totalorder %s3408_s28, %s3151_s7  ;;  %p3158_p13 = scmp.lt.u32.totalorder %s3156_s10, %s3151_s7 }
  0x1b   : > { %p3160_p2 = scmp.lt.u32.totalorder %s3151_s7, %s3408_s28 }
  0x1c   : > { %p3154_p10 = pnand %p3153_p9, %p3152_p8  ;;  %p3159_p0 = por %p3158_p13, %p3157_p12 }
  0x1e   : > { %p3155_p11 = pneg %p3154_p10  ;;  %p3161_p4 = por %p3160_p2, %p3159_p0 }
  0x20   : > { %p3162_p5 = pnand %p3161_p4, %p3155_p11 }
  0x22   : > { %3165 = shalt.err (!%p3162_p5)
}
  0x23   : > { %s3166_s20 = scalar_lea.vmem %s3414_s4, 32768  ;;  %s3327_s21 = smov [#allocation5]  }
  0x24   : > { %p3167_p6 = scmp.ne.s32.totalorder %s3414_s4, %s3166_s20  ;;  %s3171_s22 = sshll.u32 %s3327_s21, 4  ;;  %s3172_s22 = int_to_ptr.vmem [resolvable:$false] %s3171_s22 }
  0x25   : > { %s3173_s23 = scalar_lea.vmem %s3172_s22, 65536  ;;  %p3174_p3 = scmp.lt.s32.totalorder %s3414_s4, %s3172_s22 }
  0x26   : > { %p3169_p8 = pnand %p3167_p6, %p3153_p9  ;;  %p3175_p12 = scmp.lt.s32.totalorder %s3173_s23, %s3166_s20 }
  0x28   : > { %p3170_p10 = pneg %p3169_p8  ;;  %p3176_p13 = por %p3175_p12, %p3174_p3 }
  0x2a   : > { %p3177_p0 = pnand %p3176_p13, %p3170_p10 }
  0x2c   : > { %3180 = shalt.err (!%p3177_p0)
}
  0x2d   : > { %s3328_s25 = smov 512   ;;  %s3329_s26 = smov 32  }
  0x2e   : > { %3046 = dma.hbm_to_vmem [thread:$0]  (!%p3410_p7), %s3408_s28, 32768, %s3414_s4, %s3418_s6, %s3328_s25, %s3328_s25, %s3329_s26  }
  0x2f   : > { %s191_s27 = scalar_lea.vmem [#allocation7], %s3416_s5  ;;  %s3448_s7 = sadd.s32 4294967295, %s3325_s17  }
  0x30   : > { %s199_s30 = sshll.u32 %s191_s27, 4  ;;  %s2642_s8 = sadd.s32 4294967294, %s3325_s17   ;;  %s3486_s30 = int_to_ptr.vmem [resolvable:$true] %s199_s30 }
  0x31   : > { %p75_p3 = scmp.ne.s32.totalorder %s3309_s13, %s3305_s12  ;;  %p3931_p11 = scmp.eq.s32.totalorder %s3448_s7, 0 }
  0x32   : > { %p127_p2 = scmp.eq.s32.totalorder %s3448_s7, 1  ;;  %p133_p4 = scmp.eq.s32.totalorder %s2642_s8, 1 }
  0x33   : > { %p3457_p5 = por %p3931_p11, %p75_p3  ;;  %p2643_p6 = scmp.ge.s32.totalorder %s3325_s17, 1 }
  0x34   : > { %p3465_p8 = por %p127_p2, %p69_p1  ;;  %p3469_p10 = por %p133_p4, %p75_p3 }
  0x35   : > { %s3939_s9 = scalar_select %p3457_p5, 1, 0 }
  0x36   : > { %s3940_s28 = scalar_select %p3465_p8, 1, 0 }
  0x37   : > { %s3941_s4 = scalar_select %p3469_p10, 1, 0 }
  0x38   : > { %p140_p12 = scmp.lt.s32.totalorder %s3325_s17, 3  ;;  %s2960_s5 = sshll.u32 %s3321_s16, 12 }
  0x39   : > { %s3330_s11 = smov [#allocation2]   ;;  %s3943_s2 = sld [smem:[#allocation13_spill]] }
  0x3a   : > { %p3475_p13 = pnand %p2643_p6, %p140_p12  ;;  %s153_s19 = sshll.u32 %s3330_s11, 4  ;;  %s3488_s19 = int_to_ptr.vmem [resolvable:$true] %s153_s19 }
  0x3c   : > { %s3942_s10 = scalar_select %p3475_p13, 1, 0 }
  0x3d   : > { %p3039_p1 = pneg %p3475_p13 }
  0x3f   : > { %s3482_s22 = scalar_lea.hbm %s3943_s2, %s2960_s5  ;;  %p3492_p0 = pnand %p3039_p1, %p3931_p11 }
  0x40   : > { %s3181_s25 = scalar_lea.hbm %s3482_s22, 4096  ;;  %s3186_s8 = scalar_lea.hbm %s3943_s2, 8192 }
  0x41   : > { %p3182_p3 = scmp.ne.s32.totalorder %s3482_s22, %s3181_s25  ;;  %p3187_p6 = scmp.lt.u32.totalorder %s3482_s22, %s3943_s2 }
  0x42   : > { %p3188_p12 = scmp.lt.u32.totalorder %s3186_s8, %s3181_s25  ;;  %p3190_p1 = scmp.lt.u32.totalorder %s3181_s25, %s3482_s22 }
  0x43   : > { %p3184_p2 = pnand %p3182_p3, %p3153_p9 }
  0x44   : > { %p3189_p10 = por %p3188_p12, %p3187_p6 }
  0x45   : > { %p3185_p4 = pneg %p3184_p2 }
  0x46   : > { %p3191_p11 = por %p3190_p1, %p3189_p10 }
  0x48   : > { %p3192_p8 = pnand %p3191_p11, %p3185_p4 }
  0x4a   : > { %3195 = shalt.err (!%p3192_p8)
}
  0x4b   : > { %s3196_s20 = scalar_lea.vmem %s3486_s30, 4096  ;;  %s3331_s21 = smov [#allocation7]  }
  0x4c   : > { %p3197_p3 = scmp.ne.s32.totalorder %s3486_s30, %s3196_s20  ;;  %s3201_s26 = sshll.u32 %s3331_s21, 4  ;;  %s3202_s26 = int_to_ptr.vmem [resolvable:$false] %s3201_s26 }
  0x4d   : > { %s3203_s27 = scalar_lea.vmem %s3202_s26, 8192  ;;  %p3204_p13 = scmp.lt.s32.totalorder %s3486_s30, %s3202_s26 }
  0x4e   : > { %p3199_p2 = pnand %p3197_p3, %p3153_p9  ;;  %p3205_p6 = scmp.lt.s32.totalorder %s3203_s27, %s3196_s20 }
  0x50   : > { %p3200_p5 = pneg %p3199_p2  ;;  %p3206_p12 = por %p3205_p6, %p3204_p13 }
  0x52   : > { %p3207_p10 = pnand %p3206_p12, %p3200_p5 }
  0x54   : > { %3210 = shalt.err (!%p3207_p10)
}
  0x55   : > { %s3332_s25 = smov 64   ;;  %s3333_s8 = smov 4  }
  0x56   : > { %3049 = dma.hbm_to_vmem [thread:$0]  (!%p3410_p7), %s3482_s22, 4096, %s3486_s30, %s3418_s6, %s3332_s25, %s3332_s25, %s3333_s8  }
  0x57   : > { %s3211_s21 = scalar_lea.hbm %s3927_s0, 512  ;;  %p3213_p11 = pneg %p3492_p0 }
  0x58   : > { %p3212_p9 = scmp.ne.s32.totalorder %s3927_s0, %s3211_s21  ;;  %p3218_p13 = scmp.lt.u32.totalorder %s3211_s21, %s3927_s0 }
  0x5a   : > { %p3214_p5 = pnand %p3213_p11, %p3212_p9 }
  0x5c   : > { %p3215_p8 = pneg %p3214_p5 }
  0x5e   : > { %p3220_p4 = pnand %p3218_p13, %p3215_p8 }
  0x60   : > { %3223 = shalt.err (!%p3220_p4)
}
  0x61   : > { %s3224_s29 = scalar_lea.vmem %s3488_s19, 512  ;;  %p3232_p2 = scmp.lt.s32.totalorder %s3488_s19, %s3488_s19 }
  0x62   : > { %p3225_p7 = scmp.ne.s32.totalorder %s3488_s19, %s3224_s29  ;;  %p3233_p6 = scmp.lt.s32.totalorder %s3224_s29, %s3224_s29 }
  0x64   : > { %p3227_p1 = pnand %p3225_p7, %p3213_p11  ;;  %p3234_p12 = por %p3233_p6, %p3232_p2 }
  0x66   : > { %p3228_p3 = pneg %p3227_p1 }
  0x68   : > { %p3235_p10 = pnand %p3234_p12, %p3228_p3 }
  0x6a   : > { %3238 = shalt.err (!%p3235_p10)
}
  0x6b   : > { %3042 = dma.hbm_to_vmem [thread:$0]  (!%p3492_p0), %s3927_s0, 512, %s3488_s19, [#allocation3]  }
  0x6c   : > { %p3945_p9 = scmp.ne.s32.totalorder %s3942_s10, 0 }
  0x6d   : > { %p3946_p5 = scmp.eq.s32.totalorder (!%p3945_p9), %s3448_s7, 0 }
  0x6e   : > { %211 = sbr.rel (%p3945_p9) target bundleno = 1090 (0x442), region = 32 }
  0x75   : > { %3292 = dma.done.wait (%p3946_p5), [#allocation3], 512   ;;  %p3947_p11 = pmov %p3946_p5 }
  0x76   : > { %s217_s6 = sand.u32 1, %s3448_s7   ;;  %s3549_s30 = sand.u32 1, %s3309_s13  }
  0x77   : > { %3294 = vsyncadd (%p3947_p11), [#allocation3], 4294966784  ;;  %s2655_s22 = sshll.u32 %s3549_s30, 11  ;;  %s218_s23 = scalar_lea.sflag [#allocation6], %s217_s6 }
  0x78   : > { %s3552_s27 = scalar_lea.vmem [#allocation5], %s2655_s22  ;;  %p3948_p0 = scmp.ne.s32.totalorder %s3939_s9, 0 }
  0x7a   : > { %3296 = dma.done.wait (%p3948_p0), %s218_s23, 36864  }
  0x7b   : > { %3298 = vsyncadd (%p3948_p0), %s218_s23, 4294930432  ;;  %v267_v0 = vld [vmem:[%s3552_s27] sm:$0xff]  ;;  %s2656_s7 = sshll.u32 %s3549_s30, 8  ;;  %s2657_s10 = sshll.u32 %s3549_s30, 3 }
  0x7c   : > { %v271_v1 = vld [vmem:[%s3552_s27 + $0x20] sm:$0xff]  ;;  %s3784_s9 = scalar_lea.vmem [#allocation7], %s2656_s7  ;;  %s2955_s19 = sshll.u32 %s3317_s15, 7 }
  0x7d   : > { %v395_v2 = vld [vmem:[%s3552_s27 + $0x400] sm:$0xff]  ;;  %v2667_v3 = vcombine.high %v267_v0, %v271_v1  ;;  %v2666_v5 = vcombine.low %v267_v0, %v271_v1  ;;  %s257_s25 = scalar_lea.vmem [#allocation8], %s2657_s10  ;;  %s3878_s21 = scalar_lea.hbm %s3930_s3, %s2955_s19 }
  0x7e   : > { %v399_v4 = vld [vmem:[%s3552_s27 + $0x420] sm:$0xff]  ;;  %s2529_s8 = sshll.u32 %s257_s25, 4  ;;  %s2516_s20 = scalar_lea.sflag [#allocation4], %s3549_s30  ;;  %s3880_s8 = int_to_ptr.vmem [resolvable:$true] %s2529_s8 }
  0x7f   : > { %v275_v6 = vld [vmem:[%s3552_s27 + $0x40] sm:$0xff]  ;;  %v2795_v8 = vcombine.high %v395_v2, %v399_v4  ;;  %v2794_v9 = vcombine.low %v395_v2, %v399_v4  ;;  %1831 = vmatprep.subr.bf16.mxu0 %v2667_v3  ;;  %s3239_s15 = scalar_lea.vmem %s3880_s8, 128  ;;  %p3949_p13 = scmp.ne.s32.totalorder %s3940_s28, 0 }
  0x80   : > { %v279_v7 = vld [vmem:[%s3552_s27 + $0x60] sm:$0xff]  ;;  %1832 = vmatpush1.bf16.xpose.msra.mxu0 %v2666_v5  ;;  %p3240_p8 = scmp.ne.s32.totalorder %s3880_s8, %s3239_s15  ;;  %s3334_s26 = smov [#allocation8]  }
  0x81   : > { %v2675_v10 = vcombine.high %v275_v6, %v279_v7  ;;  %v403_v11 = vld [vmem:[%s3552_s27 + $0x440] sm:$0xff]  ;;  %1995 = vmatprep.subr.bf16.mxu1 %v2795_v8  ;;  %v2674_v18 = vcombine.low %v275_v6, %v279_v7  ;;  %s3243_s29 = sshll.u32 %s3334_s26, 4  ;;  %s3244_s29 = int_to_ptr.vmem [resolvable:$false] %s3243_s29 }
  0x82   : > { %v407_v12 = vld [vmem:[%s3552_s27 + $0x460] sm:$0xff]  ;;  %1996 = vmatpush1.bf16.xpose.msra.mxu1 %v2794_v9  ;;  %p3241_p4 = pnand %p3240_p8, %p3949_p13  ;;  %s3245_s1 = scalar_lea.vmem %s3244_s29, 256 }
  0x83   : > { %v2803_v13 = vcombine.high %v403_v11, %v407_v12  ;;  %1833 = vmatprep.subr.bf16.mxu0 %v2675_v10  ;;  %v283_v14 = vld [vmem:[%s3552_s27 + $0x80] sm:$0xff]  ;;  %v2802_v19 = vcombine.low %v403_v11, %v407_v12  ;;  %p3246_p1 = scmp.lt.s32.totalorder %s3880_s8, %s3244_s29  ;;  %p3247_p3 = scmp.lt.s32.totalorder %s3245_s1, %s3239_s15 }
  0x84   : > { %v287_v15 = vld [vmem:[%s3552_s27 + $0xa0] sm:$0xff]  ;;  %p3242_p7 = pneg %p3241_p4 }
  0x85   : > { %1997 = vmatprep.subr.bf16.mxu1 %v2803_v13  ;;  %v411_v16 = vld [vmem:[%s3552_s27 + $0x480] sm:$0xff]  ;;  %v2683_v20 = vcombine.high %v283_v14, %v287_v15  ;;  %v2682_v26 = vcombine.low %v283_v14, %v287_v15  ;;  %p3248_p2 = por %p3247_p3, %p3246_p1 }
  0x86   : > { %v415_v17 = vld [vmem:[%s3552_s27 + $0x4a0] sm:$0xff] }
  0x87   : > { %v2811_v21 = vcombine.high %v411_v16, %v415_v17  ;;  %v291_v22 = vld [vmem:[%s3552_s27 + $0xc0] sm:$0xff]  ;;  %v2810_v27 = vcombine.low %v411_v16, %v415_v17  ;;  %p3249_p6 = pnand %p3248_p2, %p3242_p7 }
  0x88   : > { %1834 = vmatpush1.bf16.xpose.msra.mxu0 %v2674_v18  ;;  %v295_v23 = vld [vmem:[%s3552_s27 + $0xe0] sm:$0xff] }
  0x89   : > { %1835 = vmatprep.subr.bf16.mxu0 %v2683_v20  ;;  %v419_v24 = vld [vmem:[%s3552_s27 + $0x4c0] sm:$0xff]  ;;  %v2691_v28 = vcombine.high %v291_v22, %v295_v23  ;;  %v2690_v36 = vcombine.low %v291_v22, %v295_v23 }
  0x8a   : > { %1998 = vmatpush1.bf16.xpose.msra.mxu1 %v2802_v19  ;;  %v423_v25 = vld [vmem:[%s3552_s27 + $0x4e0] sm:$0xff] }
  0x8b   : > { %1999 = vmatprep.subr.bf16.mxu1 %v2811_v21  ;;  %v2819_v29 = vcombine.high %v419_v24, %v423_v25  ;;  %v3574_v30 = vld [vmem:[#allocation2] sm:$0xff]  ;;  %v2818_v37 = vcombine.low %v419_v24, %v423_v25 }
  0x8c   : > { %v299_v31 = vld [vmem:[%s3552_s27 + $0x100] sm:$0xff]  ;;  %v2659_v33 = vcombine.high %v3574_v30, %v3574_v30 }
  0x8d   : > { %v303_v32 = vld [vmem:[%s3552_s27 + $0x120] sm:$0xff] }
  0x8e   : > { %v427_v34 = vld [vmem:[%s3552_s27 + $0x500] sm:$0xff]  ;;  %1863 = vmatprep.mubr.bf16.mxu0 %v2659_v33  ;;  %2027 = vmatprep.mubr.bf16.mxu1 %v2659_v33  ;;  %v2699_v38 = vcombine.high %v299_v31, %v303_v32  ;;  %v2698_v44 = vcombine.low %v299_v31, %v303_v32 }
  0x8f   : > { %v431_v35 = vld [vmem:[%s3552_s27 + $0x520] sm:$0xff] }
  0x90   : > { %1836 = vmatpush1.bf16.xpose.msra.mxu0 %v2682_v26  ;;  %v2827_v39 = vcombine.high %v427_v34, %v431_v35  ;;  %v307_v40 = vld [vmem:[%s3552_s27 + $0x140] sm:$0xff]  ;;  %v2826_v45 = vcombine.low %v427_v34, %v431_v35 }
  0x91   : > { %1837 = vmatprep.subr.bf16.mxu0 %v2691_v28  ;;  %v311_v41 = vld [vmem:[%s3552_s27 + $0x160] sm:$0xff] }
  0x92   : > { %2000 = vmatpush1.bf16.xpose.msra.mxu1 %v2810_v27  ;;  %v435_v42 = vld [vmem:[%s3552_s27 + $0x540] sm:$0xff]  ;;  %v2707_v46 = vcombine.high %v307_v40, %v311_v41  ;;  %v2706_v52 = vcombine.low %v307_v40, %v311_v41 }
  0x93   : > { %2001 = vmatprep.subr.bf16.mxu1 %v2819_v29  ;;  %v439_v43 = vld [vmem:[%s3552_s27 + $0x560] sm:$0xff] }
  0x94   : > { %v2835_v47 = vcombine.high %v435_v42, %v439_v43  ;;  %v315_v48 = vld [vmem:[%s3552_s27 + $0x180] sm:$0xff]  ;;  %v2834_v53 = vcombine.low %v435_v42, %v439_v43 }
  0x95   : > { %v319_v49 = vld [vmem:[%s3552_s27 + $0x1a0] sm:$0xff] }
  0x96   : > { %v443_v50 = vld [vmem:[%s3552_s27 + $0x580] sm:$0xff]  ;;  %v2715_v54 = vcombine.high %v315_v48, %v319_v49  ;;  %v2714_v60 = vcombine.low %v315_v48, %v319_v49 }
  0x97   : > { %v447_v51 = vld [vmem:[%s3552_s27 + $0x5a0] sm:$0xff] }
  0x98   : > { %1838 = vmatpush1.bf16.xpose.msra.mxu0 %v2690_v36  ;;  %v2843_v55 = vcombine.high %v443_v50, %v447_v51  ;;  %v323_v56 = vld [vmem:[%s3552_s27 + $0x1c0] sm:$0xff]  ;;  %v2842_v61 = vcombine.low %v443_v50, %v447_v51 }
  0x99   : > { %1839 = vmatprep.subr.bf16.mxu0 %v2699_v38  ;;  %v327_v57 = vld [vmem:[%s3552_s27 + $0x1e0] sm:$0xff] }
  0x9a   : > { %2002 = vmatpush1.bf16.xpose.msra.mxu1 %v2818_v37  ;;  %v451_v58 = vld [vmem:[%s3552_s27 + $0x5c0] sm:$0xff]  ;;  %v2723_v62 = vcombine.high %v323_v56, %v327_v57  ;;  %v2722_v4 = vcombine.low %v323_v56, %v327_v57 }
  0x9b   : > { %2003 = vmatprep.subr.bf16.mxu1 %v2827_v39  ;;  %v455_v59 = vld [vmem:[%s3552_s27 + $0x5e0] sm:$0xff] }
  0x9c   : > { %v2851_v63 = vcombine.high %v451_v58, %v455_v59  ;;  %v331_v0 = vld [vmem:[%s3552_s27 + $0x200] sm:$0xff]  ;;  %v2850_v5 = vcombine.low %v451_v58, %v455_v59 }
  0x9d   : > { %v335_v1 = vld [vmem:[%s3552_s27 + $0x220] sm:$0xff] }
  0x9e   : > { %v459_v2 = vld [vmem:[%s3552_s27 + $0x600] sm:$0xff]  ;;  %v2731_v6 = vcombine.high %v331_v0, %v335_v1  ;;  %v2730_v12 = vcombine.low %v331_v0, %v335_v1  ;;  %v268_v1 = vld [vmem:[%s3552_s27 + $0x8] sm:$0xff] }
  0x9f   : > { %v463_v3 = vld [vmem:[%s3552_s27 + $0x620] sm:$0xff] }
  0xa0   : > { %1840 = vmatpush1.bf16.xpose.msra.mxu0 %v2698_v44  ;;  %v2859_v7 = vcombine.high %v459_v2, %v463_v3  ;;  %v339_v8 = vld [vmem:[%s3552_s27 + $0x240] sm:$0xff]  ;;  %v2858_v13 = vcombine.low %v459_v2, %v463_v3  ;;  %v272_v2 = vld [vmem:[%s3552_s27 + $0x28] sm:$0xff] }
  0xa1   : > { %1841 = vmatprep.subr.bf16.mxu0 %v2707_v46  ;;  %v343_v9 = vld [vmem:[%s3552_s27 + $0x260] sm:$0xff]  ;;  %v396_v3 = vld [vmem:[%s3552_s27 + $0x408] sm:$0xff] }
  0xa2   : > { %2004 = vmatpush1.bf16.xpose.msra.mxu1 %v2826_v45  ;;  %v467_v10 = vld [vmem:[%s3552_s27 + $0x640] sm:$0xff]  ;;  %v2739_v14 = vcombine.high %v339_v8, %v343_v9  ;;  %v2738_v20 = vcombine.low %v339_v8, %v343_v9  ;;  %v276_v9 = vld [vmem:[%s3552_s27 + $0x48] sm:$0xff] }
  0xa3   : > { %2005 = vmatprep.subr.bf16.mxu1 %v2835_v47  ;;  %v471_v11 = vld [vmem:[%s3552_s27 + $0x660] sm:$0xff] }
  0xa4   : > { %v2867_v15 = vcombine.high %v467_v10, %v471_v11  ;;  %v347_v16 = vld [vmem:[%s3552_s27 + $0x280] sm:$0xff]  ;;  %v2866_v21 = vcombine.low %v467_v10, %v471_v11  ;;  %v280_v10 = vld [vmem:[%s3552_s27 + $0x68] sm:$0xff]  ;;  %v2658_v11 = vcombine.low %v3574_v30, %v3574_v30 }
  0xa5   : > { %v351_v17 = vld [vmem:[%s3552_s27 + $0x2a0] sm:$0xff]  ;;  %v284_v30 = vld [vmem:[%s3552_s27 + $0x88] sm:$0xff] }
  0xa6   : > { %v475_v18 = vld [vmem:[%s3552_s27 + $0x680] sm:$0xff]  ;;  %v2747_v22 = vcombine.high %v347_v16, %v351_v17  ;;  %v2746_v28 = vcombine.low %v347_v16, %v351_v17  ;;  %v2677_v17 = vcombine.high %v276_v9, %v280_v10 }
  0xa7   : > { %v479_v19 = vld [vmem:[%s3552_s27 + $0x6a0] sm:$0xff] }
  0xa8   : > { %1842 = vmatpush1.bf16.xpose.msra.mxu0 %v2706_v52  ;;  %v2875_v23 = vcombine.high %v475_v18, %v479_v19  ;;  %v355_v24 = vld [vmem:[%s3552_s27 + $0x2c0] sm:$0xff]  ;;  %v2874_v29 = vcombine.low %v475_v18, %v479_v19 }
  0xa9   : > { %1843 = vmatprep.subr.bf16.mxu0 %v2715_v54  ;;  %v359_v25 = vld [vmem:[%s3552_s27 + $0x2e0] sm:$0xff] }
  0xaa   : > { %2006 = vmatpush1.bf16.xpose.msra.mxu1 %v2834_v53  ;;  %v483_v26 = vld [vmem:[%s3552_s27 + $0x6c0] sm:$0xff]  ;;  %v2755_v31 = vcombine.high %v355_v24, %v359_v25  ;;  %v2754_v37 = vcombine.low %v355_v24, %v359_v25 }
  0xab   : > { %2007 = vmatprep.subr.bf16.mxu1 %v2843_v55  ;;  %v487_v27 = vld [vmem:[%s3552_s27 + $0x6e0] sm:$0xff] }
  0xac   : > { %v2883_v32 = vcombine.high %v483_v26, %v487_v27  ;;  %v363_v33 = vld [vmem:[%s3552_s27 + $0x300] sm:$0xff]  ;;  %v2882_v38 = vcombine.low %v483_v26, %v487_v27  ;;  %v292_v27 = vld [vmem:[%s3552_s27 + $0xc8] sm:$0xff] }
  0xad   : > { %v367_v34 = vld [vmem:[%s3552_s27 + $0x320] sm:$0xff] }
  0xae   : > { %v491_v35 = vld [vmem:[%s3552_s27 + $0x700] sm:$0xff]  ;;  %v2763_v39 = vcombine.high %v363_v33, %v367_v34  ;;  %v2762_v45 = vcombine.low %v363_v33, %v367_v34 }
  0xaf   : > { %v495_v36 = vld [vmem:[%s3552_s27 + $0x720] sm:$0xff] }
  0xb0   : > { %1844 = vmatpush1.bf16.xpose.msra.mxu0 %v2714_v60  ;;  %v2891_v40 = vcombine.high %v491_v35, %v495_v36  ;;  %v371_v41 = vld [vmem:[%s3552_s27 + $0x340] sm:$0xff]  ;;  %v2890_v46 = vcombine.low %v491_v35, %v495_v36  ;;  %v300_v36 = vld [vmem:[%s3552_s27 + $0x108] sm:$0xff] }
  0xb1   : > { %1845 = vmatprep.subr.bf16.mxu0 %v2723_v62  ;;  %v375_v42 = vld [vmem:[%s3552_s27 + $0x360] sm:$0xff] }
  0xb2   : > { %2008 = vmatpush1.bf16.xpose.msra.mxu1 %v2842_v61  ;;  %v499_v43 = vld [vmem:[%s3552_s27 + $0x740] sm:$0xff]  ;;  %v2771_v47 = vcombine.high %v371_v41, %v375_v42  ;;  %v2770_v53 = vcombine.low %v371_v41, %v375_v42 }
  0xb3   : > { %2009 = vmatprep.subr.bf16.mxu1 %v2851_v63  ;;  %v503_v44 = vld [vmem:[%s3552_s27 + $0x760] sm:$0xff] }
  0xb4   : > { %v2899_v48 = vcombine.high %v499_v43, %v503_v44  ;;  %v379_v49 = vld [vmem:[%s3552_s27 + $0x380] sm:$0xff]  ;;  %v2898_v54 = vcombine.low %v499_v43, %v503_v44  ;;  %v308_v44 = vld [vmem:[%s3552_s27 + $0x148] sm:$0xff] }
  0xb5   : > { %v383_v50 = vld [vmem:[%s3552_s27 + $0x3a0] sm:$0xff] }
  0xb6   : > { %v507_v51 = vld [vmem:[%s3552_s27 + $0x780] sm:$0xff]  ;;  %v2779_v55 = vcombine.high %v379_v49, %v383_v50  ;;  %v2778_v61 = vcombine.low %v379_v49, %v383_v50 }
  0xb7   : > { %v511_v52 = vld [vmem:[%s3552_s27 + $0x7a0] sm:$0xff] }
  0xb8   : > { %1846 = vmatpush1.bf16.xpose.msra.mxu0 %v2722_v4  ;;  %v2907_v56 = vcombine.high %v507_v51, %v511_v52  ;;  %v387_v57 = vld [vmem:[%s3552_s27 + $0x3c0] sm:$0xff]  ;;  %v2906_v62 = vcombine.low %v507_v51, %v511_v52  ;;  %v400_v4 = vld [vmem:[%s3552_s27 + $0x428] sm:$0xff] }
  0xb9   : > { %1847 = vmatprep.subr.bf16.mxu0 %v2731_v6  ;;  %v391_v58 = vld [vmem:[%s3552_s27 + $0x3e0] sm:$0xff]  ;;  %v2797_v8 = vcombine.high %v396_v3, %v400_v4  ;;  %v2796_v16 = vcombine.low %v396_v3, %v400_v4  ;;  %v316_v52 = vld [vmem:[%s3552_s27 + $0x188] sm:$0xff] }
  0xba   : > { %2010 = vmatpush1.bf16.xpose.msra.mxu1 %v2850_v5  ;;  %v515_v59 = vld [vmem:[%s3552_s27 + $0x7c0] sm:$0xff]  ;;  %v2787_v63 = vcombine.high %v387_v57, %v391_v58  ;;  %v2786_v5 = vcombine.low %v387_v57, %v391_v58  ;;  %v332_v4 = vld [vmem:[%s3552_s27 + $0x208] sm:$0xff] }
  0xbb   : > { %2011 = vmatprep.subr.bf16.mxu1 %v2859_v7  ;;  %v519_v60 = vld [vmem:[%s3552_s27 + $0x7e0] sm:$0xff]  ;;  %v2669_v7 = vcombine.high %v268_v1, %v272_v2 }
  0xbc   : > { %v2915_v0 = vcombine.high %v515_v59, %v519_v60  ;;  %v2914_v6 = vcombine.low %v515_v59, %v519_v60  ;;  %v324_v60 = vld [vmem:[%s3552_s27 + $0x1c8] sm:$0xff] }
  0xc0   : > { %1848 = vmatpush1.bf16.xpose.msra.mxu0 %v2730_v12  ;;  %v404_v12 = vld [vmem:[%s3552_s27 + $0x448] sm:$0xff] }
  0xc1   : > { %1849 = vmatprep.subr.bf16.mxu0 %v2739_v14  ;;  %v3636_v14 = vld [vmem:[#allocation2 + $0x8] sm:$0xff] }
  0xc2   : > { %2012 = vmatpush1.bf16.xpose.msra.mxu1 %v2858_v13  ;;  %v408_v13 = vld [vmem:[%s3552_s27 + $0x468] sm:$0xff]  ;;  %v2661_v19 = vcombine.high %v3636_v14, %v3636_v14 }
  0xc3   : > { %2013 = vmatprep.subr.bf16.mxu1 %v2867_v15  ;;  %v2668_v15 = vcombine.low %v268_v1, %v272_v2  ;;  %v2805_v18 = vcombine.high %v404_v12, %v408_v13  ;;  %v2804_v24 = vcombine.low %v404_v12, %v408_v13  ;;  %v340_v12 = vld [vmem:[%s3552_s27 + $0x248] sm:$0xff] }
  0xc4   : > { %v344_v13 = vld [vmem:[%s3552_s27 + $0x268] sm:$0xff] }
  0xc8   : > { %1850 = vmatpush1.bf16.xpose.msra.mxu0 %v2738_v20  ;;  %v288_v20 = vld [vmem:[%s3552_s27 + $0xa8] sm:$0xff] }
  0xc9   : > { %1851 = vmatprep.subr.bf16.mxu0 %v2747_v22  ;;  %v416_v22 = vld [vmem:[%s3552_s27 + $0x4a8] sm:$0xff]  ;;  %v2685_v25 = vcombine.high %v284_v30, %v288_v20 }
  0xca   : > { %2014 = vmatpush1.bf16.xpose.msra.mxu1 %v2866_v21  ;;  %v412_v21 = vld [vmem:[%s3552_s27 + $0x488] sm:$0xff] }
  0xcb   : > { %2015 = vmatprep.subr.bf16.mxu1 %v2875_v23  ;;  %v2676_v23 = vcombine.low %v276_v9, %v280_v10  ;;  %v2813_v26 = vcombine.high %v412_v21, %v416_v22  ;;  %v2812_v33 = vcombine.low %v412_v21, %v416_v22  ;;  %v352_v21 = vld [vmem:[%s3552_s27 + $0x2a8] sm:$0xff] }
  0xcc   : > { %v476_v22 = vld [vmem:[%s3552_s27 + $0x688] sm:$0xff] }
  0xd0   : > { %1852 = vmatpush1.bf16.xpose.msra.mxu0 %v2746_v28  ;;  %v296_v28 = vld [vmem:[%s3552_s27 + $0xe8] sm:$0xff] }
  0xd1   : > { %1853 = vmatprep.subr.bf16.mxu0 %v2755_v31  ;;  %v424_v31 = vld [vmem:[%s3552_s27 + $0x4e8] sm:$0xff]  ;;  %v2693_v34 = vcombine.high %v292_v27, %v296_v28 }
  0xd2   : > { %2016 = vmatpush1.bf16.xpose.msra.mxu1 %v2874_v29  ;;  %v420_v29 = vld [vmem:[%s3552_s27 + $0x4c8] sm:$0xff] }
  0xd3   : > { %2017 = vmatprep.subr.bf16.mxu1 %v2883_v32  ;;  %v2684_v32 = vcombine.low %v284_v30, %v288_v20  ;;  %v2821_v35 = vcombine.high %v420_v29, %v424_v31  ;;  %v2820_v41 = vcombine.low %v420_v29, %v424_v31  ;;  %v348_v20 = vld [vmem:[%s3552_s27 + $0x288] sm:$0xff] }
  0xd4   : > { %v360_v29 = vld [vmem:[%s3552_s27 + $0x2e8] sm:$0xff] }
  0xd5   : > { %v484_v31 = vld [vmem:[%s3552_s27 + $0x6c8] sm:$0xff] }
  0xd8   : > { %1854 = vmatpush1.bf16.xpose.msra.mxu0 %v2754_v37  ;;  %v304_v37 = vld [vmem:[%s3552_s27 + $0x128] sm:$0xff] }
  0xd9   : > { %1855 = vmatprep.subr.bf16.mxu0 %v2763_v39  ;;  %v432_v39 = vld [vmem:[%s3552_s27 + $0x528] sm:$0xff]  ;;  %v2701_v42 = vcombine.high %v300_v36, %v304_v37 }
  0xda   : > { %2018 = vmatpush1.bf16.xpose.msra.mxu1 %v2882_v38  ;;  %v428_v38 = vld [vmem:[%s3552_s27 + $0x508] sm:$0xff] }
  0xdb   : > { %2019 = vmatprep.subr.bf16.mxu1 %v2891_v40  ;;  %v2692_v40 = vcombine.low %v292_v27, %v296_v28  ;;  %v2829_v43 = vcombine.high %v428_v38, %v432_v39  ;;  %v2828_v49 = vcombine.low %v428_v38, %v432_v39  ;;  %v356_v28 = vld [vmem:[%s3552_s27 + $0x2c8] sm:$0xff] }
  0xdc   : > { %v368_v38 = vld [vmem:[%s3552_s27 + $0x328] sm:$0xff] }
  0xdd   : > { %v492_v39 = vld [vmem:[%s3552_s27 + $0x708] sm:$0xff] }
  0xe0   : > { %1856 = vmatpush1.bf16.xpose.msra.mxu0 %v2762_v45  ;;  %v312_v45 = vld [vmem:[%s3552_s27 + $0x168] sm:$0xff] }
  0xe1   : > { %1857 = vmatprep.subr.bf16.mxu0 %v2771_v47  ;;  %v440_v47 = vld [vmem:[%s3552_s27 + $0x568] sm:$0xff]  ;;  %v2709_v50 = vcombine.high %v308_v44, %v312_v45 }
  0xe2   : > { %2020 = vmatpush1.bf16.xpose.msra.mxu1 %v2890_v46  ;;  %v436_v46 = vld [vmem:[%s3552_s27 + $0x548] sm:$0xff] }
  0xe3   : > { %2021 = vmatprep.subr.bf16.mxu1 %v2899_v48  ;;  %v2700_v48 = vcombine.low %v300_v36, %v304_v37  ;;  %v2837_v51 = vcombine.high %v436_v46, %v440_v47  ;;  %v2836_v57 = vcombine.low %v436_v46, %v440_v47  ;;  %v364_v37 = vld [vmem:[%s3552_s27 + $0x308] sm:$0xff] }
  0xe4   : > { %v376_v46 = vld [vmem:[%s3552_s27 + $0x368] sm:$0xff] }
  0xe5   : > { %v500_v47 = vld [vmem:[%s3552_s27 + $0x748] sm:$0xff] }
  0xe8   : > { %1858 = vmatpush1.bf16.xpose.msra.mxu0 %v2770_v53  ;;  %v320_v53 = vld [vmem:[%s3552_s27 + $0x1a8] sm:$0xff] }
  0xe9   : > { %1859 = vmatprep.subr.bf16.mxu0 %v2779_v55  ;;  %v448_v55 = vld [vmem:[%s3552_s27 + $0x5a8] sm:$0xff]  ;;  %v2717_v58 = vcombine.high %v316_v52, %v320_v53 }
  0xea   : > { %2022 = vmatpush1.bf16.xpose.msra.mxu1 %v2898_v54  ;;  %v444_v54 = vld [vmem:[%s3552_s27 + $0x588] sm:$0xff] }
  0xeb   : > { %2023 = vmatprep.subr.bf16.mxu1 %v2907_v56  ;;  %v2708_v56 = vcombine.low %v308_v44, %v312_v45  ;;  %v2845_v59 = vcombine.high %v444_v54, %v448_v55  ;;  %v2844_v1 = vcombine.low %v444_v54, %v448_v55  ;;  %v372_v45 = vld [vmem:[%s3552_s27 + $0x348] sm:$0xff] }
  0xec   : > { %v384_v54 = vld [vmem:[%s3552_s27 + $0x3a8] sm:$0xff] }
  0xed   : > { %v508_v55 = vld [vmem:[%s3552_s27 + $0x788] sm:$0xff] }
  0xf0   : > { %1860 = vmatpush1.bf16.xpose.msra.mxu0 %v2778_v61  ;;  %v328_v61 = vld [vmem:[%s3552_s27 + $0x1e8] sm:$0xff] }
  0xf1   : > { %1861 = vmatprep.subr.bf16.mxu0 %v2787_v63  ;;  %v456_v63 = vld [vmem:[%s3552_s27 + $0x5e8] sm:$0xff]  ;;  %v2725_v2 = vcombine.high %v324_v60, %v328_v61 }
  0xf2   : > { %2024 = vmatpush1.bf16.xpose.msra.mxu1 %v2906_v62  ;;  %v452_v62 = vld [vmem:[%s3552_s27 + $0x5c8] sm:$0xff] }
  0xf3   : > { %2025 = vmatprep.subr.bf16.mxu1 %v2915_v0  ;;  %v2716_v0 = vcombine.low %v316_v52, %v320_v53  ;;  %v2853_v3 = vcombine.high %v452_v62, %v456_v63  ;;  %v2852_v9 = vcombine.low %v452_v62, %v456_v63  ;;  %v380_v53 = vld [vmem:[%s3552_s27 + $0x388] sm:$0xff] }
  0xf4   : > { %v392_v62 = vld [vmem:[%s3552_s27 + $0x3e8] sm:$0xff] }
  0xf5   : > { %v516_v63 = vld [vmem:[%s3552_s27 + $0x7c8] sm:$0xff] }
  0xf8   : > { %1862 = vmatpush1.bf16.xpose.msra.mxu0 %v2786_v5  ;;  %v336_v5 = vld [vmem:[%s3552_s27 + $0x228] sm:$0xff] }
  0xf9   : > { %1872 = vmatprep.subr.bf16.mxu0 %v2669_v7  ;;  %v464_v7 = vld [vmem:[%s3552_s27 + $0x628] sm:$0xff]  ;;  %v2733_v10 = vcombine.high %v332_v4, %v336_v5 }
  0xfa   : > { %2026 = vmatpush1.bf16.xpose.msra.mxu1 %v2914_v6  ;;  %v460_v6 = vld [vmem:[%s3552_s27 + $0x608] sm:$0xff] }
  0xfb   : > { %2036 = vmatprep.subr.bf16.mxu1 %v2797_v8  ;;  %v2724_v8 = vcombine.low %v324_v60, %v328_v61  ;;  %v388_v61 = vld [vmem:[%s3552_s27 + $0x3c8] sm:$0xff] }
  0xff   : > { %1864 = vmatmul.mubr.bf16.vlgmr.msra.gmra.mrb[0].mxu0 %v2658_v11 }
 0x100   : > { %1873 = vmatpush1.bf16.xpose.msra.mxu0 %v2668_v15  ;;  %1904 = vmatprep.mubr.bf16.mxu0 %v2661_v19  ;;  %v468_v15 = vld [vmem:[%s3552_s27 + $0x648] sm:$0xff] }
 0x101   : > { %2028 = vmatmul.mubr.bf16.vlgmr.msra.gmra.mrb[0].mxu1 %v2658_v11  ;;  %1874 = vmatprep.subr.bf16.mxu0 %v2677_v17  ;;  %v2861_v11 = vcombine.high %v460_v6, %v464_v7  ;;  %v2732_v17 = vcombine.low %v332_v4, %v336_v5  ;;  %v269_v5 = vld [vmem:[%s3552_s27 + $0x10] sm:$0xff] }
 0x102   : > { %2037 = vmatpush1.bf16.xpose.msra.mxu1 %v2796_v16  ;;  %2068 = vmatprep.mubr.bf16.mxu1 %v2661_v19  ;;  %v472_v16 = vld [vmem:[%s3552_s27 + $0x668] sm:$0xff]  ;;  %v2741_v19 = vcombine.high %v340_v12, %v344_v13 }
 0x103   : > { %2038 = vmatprep.subr.bf16.mxu1 %v2805_v18  ;;  %v2860_v18 = vcombine.low %v460_v6, %v464_v7  ;;  %v2869_v30 = vcombine.high %v468_v15, %v472_v16  ;;  %v273_v6 = vld [vmem:[%s3552_s27 + $0x30] sm:$0xff] }
 0x104   : > { %v397_v7 = vld [vmem:[%s3552_s27 + $0x410] sm:$0xff] }
 0x108   : > { %1875 = vmatpush1.bf16.xpose.msra.mxu0 %v2676_v23  ;;  %v480_v23 = vld [vmem:[%s3552_s27 + $0x6a8] sm:$0xff] }
 0x109   : > { %1876 = vmatprep.subr.bf16.mxu0 %v2685_v25  ;;  %v2868_v25 = vcombine.low %v468_v15, %v472_v16  ;;  %v2877_v27 = vcombine.high %v476_v22, %v480_v23  ;;  %v281_v15 = vld [vmem:[%s3552_s27 + $0x70] sm:$0xff]  ;;  %v2660_v16 = vcombine.low %v3636_v14, %v3636_v14 }
 0x10a   : > { %2039 = vmatpush1.bf16.xpose.msra.mxu1 %v2804_v24  ;;  %v2740_v24 = vcombine.low %v340_v12, %v344_v13  ;;  %v277_v13 = vld [vmem:[%s3552_s27 + $0x50] sm:$0xff] }
 0x10b   : > { %2040 = vmatprep.subr.bf16.mxu1 %v2813_v26  ;;  %v2749_v26 = vcombine.high %v348_v20, %v352_v21  ;;  %v285_v14 = vld [vmem:[%s3552_s27 + $0x90] sm:$0xff] }
 0x110   : > { %1877 = vmatpush1.bf16.xpose.msra.mxu0 %v2684_v32  ;;  %v488_v32 = vld [vmem:[%s3552_s27 + $0x6e8] sm:$0xff] }
 0x111   : > { %1878 = vmatprep.subr.bf16.mxu0 %v2693_v34  ;;  %v2876_v34 = vcombine.low %v476_v22, %v480_v23  ;;  %v2885_v36 = vcombine.high %v484_v31, %v488_v32 }
 0x112   : > { %2041 = vmatpush1.bf16.xpose.msra.mxu1 %v2812_v33  ;;  %v2748_v33 = vcombine.low %v348_v20, %v352_v21  ;;  %v2679_v21 = vcombine.high %v277_v13, %v281_v15 }
 0x113   : > { %2042 = vmatprep.subr.bf16.mxu1 %v2821_v35  ;;  %v2757_v35 = vcombine.high %v356_v28, %v360_v29 }
 0x118   : > { %1879 = vmatpush1.bf16.xpose.msra.mxu0 %v2692_v40  ;;  %v496_v40 = vld [vmem:[%s3552_s27 + $0x728] sm:$0xff] }
 0x119   : > { %1880 = vmatprep.subr.bf16.mxu0 %v2701_v42  ;;  %v2884_v42 = vcombine.low %v484_v31, %v488_v32  ;;  %v2893_v44 = vcombine.high %v492_v39, %v496_v40  ;;  %v293_v32 = vld [vmem:[%s3552_s27 + $0xd0] sm:$0xff] }
 0x11a   : > { %2043 = vmatpush1.bf16.xpose.msra.mxu1 %v2820_v41  ;;  %v2756_v41 = vcombine.low %v356_v28, %v360_v29 }
 0x11b   : > { %2044 = vmatprep.subr.bf16.mxu1 %v2829_v43  ;;  %v2765_v43 = vcombine.high %v364_v37, %v368_v38 }
 0x120   : > { %1881 = vmatpush1.bf16.xpose.msra.mxu0 %v2700_v48  ;;  %v504_v48 = vld [vmem:[%s3552_s27 + $0x768] sm:$0xff] }
 0x121   : > { %1882 = vmatprep.subr.bf16.mxu0 %v2709_v50  ;;  %v2892_v50 = vcombine.low %v492_v39, %v496_v40  ;;  %v2901_v52 = vcombine.high %v500_v47, %v504_v48  ;;  %v301_v40 = vld [vmem:[%s3552_s27 + $0x110] sm:$0xff] }
 0x122   : > { %2045 = vmatpush1.bf16.xpose.msra.mxu1 %v2828_v49  ;;  %v2764_v49 = vcombine.low %v364_v37, %v368_v38 }
 0x123   : > { %2046 = vmatprep.subr.bf16.mxu1 %v2837_v51  ;;  %v2773_v51 = vcombine.high %v372_v45, %v376_v46 }
 0x128   : > { %1883 = vmatpush1.bf16.xpose.msra.mxu0 %v2708_v56  ;;  %v512_v56 = vld [vmem:[%s3552_s27 + $0x7a8] sm:$0xff] }
 0x129   : > { %1884 = vmatprep.subr.bf16.mxu0 %v2717_v58  ;;  %v2900_v58 = vcombine.low %v500_v47, %v504_v48  ;;  %v2909_v60 = vcombine.high %v508_v55, %v512_v56  ;;  %v309_v48 = vld [vmem:[%s3552_s27 + $0x150] sm:$0xff] }
 0x12a   : > { %2047 = vmatpush1.bf16.xpose.msra.mxu1 %v2836_v57  ;;  %v2772_v57 = vcombine.low %v372_v45, %v376_v46 }
 0x12b   : > { %2048 = vmatprep.subr.bf16.mxu1 %v2845_v59  ;;  %v2781_v59 = vcombine.high %v380_v53, %v384_v54 }
 0x130   : > { %1885 = vmatpush1.bf16.xpose.msra.mxu0 %v2716_v0  ;;  %v520_v0 = vld [vmem:[%s3552_s27 + $0x7e8] sm:$0xff] }
 0x131   : > { %1886 = vmatprep.subr.bf16.mxu0 %v2725_v2  ;;  %v2908_v2 = vcombine.low %v508_v55, %v512_v56  ;;  %v2917_v4 = vcombine.high %v516_v63, %v520_v0  ;;  %v317_v56 = vld [vmem:[%s3552_s27 + $0x190] sm:$0xff] }
 0x132   : > { %2049 = vmatpush1.bf16.xpose.msra.mxu1 %v2844_v1  ;;  %v2780_v1 = vcombine.low %v380_v53, %v384_v54 }
 0x133   : > { %2050 = vmatprep.subr.bf16.mxu1 %v2853_v3  ;;  %v2789_v3 = vcombine.high %v388_v61, %v392_v62 }
 0x138   : > { %1887 = vmatpush1.bf16.xpose.msra.mxu0 %v2724_v8  ;;  %v401_v8 = vld [vmem:[%s3552_s27 + $0x430] sm:$0xff] }
 0x139   : > { %1888 = vmatprep.subr.bf16.mxu0 %v2733_v10  ;;  %v2916_v10 = vcombine.low %v516_v63, %v520_v0  ;;  %v2799_v12 = vcombine.high %v397_v7, %v401_v8  ;;  %v2798_v20 = vcombine.low %v397_v7, %v401_v8  ;;  %v325_v0 = vld [vmem:[%s3552_s27 + $0x1d0] sm:$0xff] }
 0x13a   : > { %2051 = vmatpush1.bf16.xpose.msra.mxu1 %v2852_v9  ;;  %v2788_v9 = vcombine.low %v388_v61, %v392_v62  ;;  %v333_v8 = vld [vmem:[%s3552_s27 + $0x210] sm:$0xff] }
 0x13b   : > { %2052 = vmatprep.subr.bf16.mxu1 %v2861_v11  ;;  %v2671_v11 = vcombine.high %v269_v5, %v273_v6 }
 0x140   : > { %1889 = vmatpush1.bf16.xpose.msra.mxu0 %v2732_v17  ;;  %v405_v17 = vld [vmem:[%s3552_s27 + $0x450] sm:$0xff] }
 0x141   : > { %1890 = vmatprep.subr.bf16.mxu0 %v2741_v19  ;;  %v3706_v19 = vld [vmem:[#allocation2 + $0x10] sm:$0xff] }
 0x142   : > { %2053 = vmatpush1.bf16.xpose.msra.mxu1 %v2860_v18  ;;  %v409_v18 = vld [vmem:[%s3552_s27 + $0x470] sm:$0xff]  ;;  %v2663_v23 = vcombine.high %v3706_v19, %v3706_v19 }
 0x143   : > { %2054 = vmatprep.subr.bf16.mxu1 %v2869_v30  ;;  %v2670_v30 = vcombine.low %v269_v5, %v273_v6  ;;  %v2807_v22 = vcombine.high %v405_v17, %v409_v18  ;;  %v2806_v28 = vcombine.low %v405_v17, %v409_v18  ;;  %v341_v17 = vld [vmem:[%s3552_s27 + $0x250] sm:$0xff] }
 0x144   : > { %v345_v18 = vld [vmem:[%s3552_s27 + $0x270] sm:$0xff] }
 0x148   : > { %1891 = vmatpush1.bf16.xpose.msra.mxu0 %v2740_v24  ;;  %v289_v24 = vld [vmem:[%s3552_s27 + $0xb0] sm:$0xff] }
 0x149   : > { %1892 = vmatprep.subr.bf16.mxu0 %v2749_v26  ;;  %v417_v26 = vld [vmem:[%s3552_s27 + $0x4b0] sm:$0xff]  ;;  %v2687_v29 = vcombine.high %v285_v14, %v289_v24 }
 0x14a   : > { %2055 = vmatpush1.bf16.xpose.msra.mxu1 %v2868_v25  ;;  %v413_v25 = vld [vmem:[%s3552_s27 + $0x490] sm:$0xff] }
 0x14b   : > { %2056 = vmatprep.subr.bf16.mxu1 %v2877_v27  ;;  %v2678_v27 = vcombine.low %v277_v13, %v281_v15  ;;  %v2815_v31 = vcombine.high %v413_v25, %v417_v26  ;;  %v2814_v37 = vcombine.low %v413_v25, %v417_v26  ;;  %v353_v25 = vld [vmem:[%s3552_s27 + $0x2b0] sm:$0xff] }
 0x14c   : > { %v477_v26 = vld [vmem:[%s3552_s27 + $0x690] sm:$0xff] }
 0x150   : > { %1893 = vmatpush1.bf16.xpose.msra.mxu0 %v2748_v33  ;;  %v297_v33 = vld [vmem:[%s3552_s27 + $0xf0] sm:$0xff] }
 0x151   : > { %1894 = vmatprep.subr.bf16.mxu0 %v2757_v35  ;;  %v425_v35 = vld [vmem:[%s3552_s27 + $0x4f0] sm:$0xff]  ;;  %v2695_v38 = vcombine.high %v293_v32, %v297_v33 }
 0x152   : > { %2057 = vmatpush1.bf16.xpose.msra.mxu1 %v2876_v34  ;;  %v421_v34 = vld [vmem:[%s3552_s27 + $0x4d0] sm:$0xff] }
 0x153   : > { %2058 = vmatprep.subr.bf16.mxu1 %v2885_v36  ;;  %v2686_v36 = vcombine.low %v285_v14, %v289_v24  ;;  %v2823_v39 = vcombine.high %v421_v34, %v425_v35  ;;  %v2822_v45 = vcombine.low %v421_v34, %v425_v35  ;;  %v349_v24 = vld [vmem:[%s3552_s27 + $0x290] sm:$0xff] }
 0x154   : > { %v361_v34 = vld [vmem:[%s3552_s27 + $0x2f0] sm:$0xff] }
 0x155   : > { %v485_v35 = vld [vmem:[%s3552_s27 + $0x6d0] sm:$0xff] }
 0x158   : > { %1895 = vmatpush1.bf16.xpose.msra.mxu0 %v2756_v41  ;;  %v305_v41 = vld [vmem:[%s3552_s27 + $0x130] sm:$0xff] }
 0x159   : > { %1896 = vmatprep.subr.bf16.mxu0 %v2765_v43  ;;  %v433_v43 = vld [vmem:[%s3552_s27 + $0x530] sm:$0xff]  ;;  %v2703_v46 = vcombine.high %v301_v40, %v305_v41 }
 0x15a   : > { %2059 = vmatpush1.bf16.xpose.msra.mxu1 %v2884_v42  ;;  %v429_v42 = vld [vmem:[%s3552_s27 + $0x510] sm:$0xff] }
 0x15b   : > { %2060 = vmatprep.subr.bf16.mxu1 %v2893_v44  ;;  %v2694_v44 = vcombine.low %v293_v32, %v297_v33  ;;  %v2831_v47 = vcombine.high %v429_v42, %v433_v43  ;;  %v2830_v53 = vcombine.low %v429_v42, %v433_v43  ;;  %v357_v33 = vld [vmem:[%s3552_s27 + $0x2d0] sm:$0xff] }
 0x15c   : > { %v369_v42 = vld [vmem:[%s3552_s27 + $0x330] sm:$0xff] }
 0x15d   : > { %v493_v43 = vld [vmem:[%s3552_s27 + $0x710] sm:$0xff] }
 0x160   : > { %1897 = vmatpush1.bf16.xpose.msra.mxu0 %v2764_v49  ;;  %v313_v49 = vld [vmem:[%s3552_s27 + $0x170] sm:$0xff] }
 0x161   : > { %1898 = vmatprep.subr.bf16.mxu0 %v2773_v51  ;;  %v441_v51 = vld [vmem:[%s3552_s27 + $0x570] sm:$0xff]  ;;  %v2711_v54 = vcombine.high %v309_v48, %v313_v49 }
 0x162   : > { %2061 = vmatpush1.bf16.xpose.msra.mxu1 %v2892_v50  ;;  %v437_v50 = vld [vmem:[%s3552_s27 + $0x550] sm:$0xff] }
 0x163   : > { %2062 = vmatprep.subr.bf16.mxu1 %v2901_v52  ;;  %v2702_v52 = vcombine.low %v301_v40, %v305_v41  ;;  %v2839_v55 = vcombine.high %v437_v50, %v441_v51  ;;  %v2838_v61 = vcombine.low %v437_v50, %v441_v51  ;;  %v365_v41 = vld [vmem:[%s3552_s27 + $0x310] sm:$0xff] }
 0x164   : > { %v377_v50 = vld [vmem:[%s3552_s27 + $0x370] sm:$0xff] }
 0x165   : > { %v501_v51 = vld [vmem:[%s3552_s27 + $0x750] sm:$0xff] }
 0x168   : > { %1899 = vmatpush1.bf16.xpose.msra.mxu0 %v2772_v57  ;;  %v321_v57 = vld [vmem:[%s3552_s27 + $0x1b0] sm:$0xff] }
 0x169   : > { %1900 = vmatprep.subr.bf16.mxu0 %v2781_v59  ;;  %v449_v59 = vld [vmem:[%s3552_s27 + $0x5b0] sm:$0xff]  ;;  %v2719_v62 = vcombine.high %v317_v56, %v321_v57 }
 0x16a   : > { %2063 = vmatpush1.bf16.xpose.msra.mxu1 %v2900_v58  ;;  %v445_v58 = vld [vmem:[%s3552_s27 + $0x590] sm:$0xff] }
 0x16b   : > { %2064 = vmatprep.subr.bf16.mxu1 %v2909_v60  ;;  %v2710_v60 = vcombine.low %v309_v48, %v313_v49  ;;  %v2847_v63 = vcombine.high %v445_v58, %v449_v59  ;;  %v2846_v5 = vcombine.low %v445_v58, %v449_v59  ;;  %v373_v49 = vld [vmem:[%s3552_s27 + $0x350] sm:$0xff] }
 0x16c   : > { %v385_v58 = vld [vmem:[%s3552_s27 + $0x3b0] sm:$0xff] }
 0x16d   : > { %v509_v59 = vld [vmem:[%s3552_s27 + $0x790] sm:$0xff] }
 0x170   : > { %1901 = vmatpush1.bf16.xpose.msra.mxu0 %v2780_v1  ;;  %v329_v1 = vld [vmem:[%s3552_s27 + $0x1f0] sm:$0xff] }
 0x171   : > { %1902 = vmatprep.subr.bf16.mxu0 %v2789_v3  ;;  %v457_v3 = vld [vmem:[%s3552_s27 + $0x5f0] sm:$0xff]  ;;  %v2727_v6 = vcombine.high %v325_v0, %v329_v1 }
 0x172   : > { %2065 = vmatpush1.bf16.xpose.msra.mxu1 %v2908_v2  ;;  %v453_v2 = vld [vmem:[%s3552_s27 + $0x5d0] sm:$0xff] }
 0x173   : > { %2066 = vmatprep.subr.bf16.mxu1 %v2917_v4  ;;  %v2718_v4 = vcombine.low %v317_v56, %v321_v57  ;;  %v2855_v7 = vcombine.high %v453_v2, %v457_v3  ;;  %v2854_v13 = vcombine.low %v453_v2, %v457_v3  ;;  %v381_v57 = vld [vmem:[%s3552_s27 + $0x390] sm:$0xff] }
 0x174   : > { %v393_v2 = vld [vmem:[%s3552_s27 + $0x3f0] sm:$0xff] }
 0x175   : > { %v517_v3 = vld [vmem:[%s3552_s27 + $0x7d0] sm:$0xff] }
 0x178   : > { %1903 = vmatpush1.bf16.xpose.msra.mxu0 %v2788_v9  ;;  %v337_v9 = vld [vmem:[%s3552_s27 + $0x230] sm:$0xff] }
 0x179   : > { %1913 = vmatprep.subr.bf16.mxu0 %v2671_v11  ;;  %v465_v11 = vld [vmem:[%s3552_s27 + $0x630] sm:$0xff]  ;;  %v2735_v15 = vcombine.high %v333_v8, %v337_v9 }
 0x17a   : > { %2067 = vmatpush1.bf16.xpose.msra.mxu1 %v2916_v10  ;;  %v461_v10 = vld [vmem:[%s3552_s27 + $0x610] sm:$0xff] }
 0x17b   : > { %2077 = vmatprep.subr.bf16.mxu1 %v2799_v12  ;;  %v2726_v12 = vcombine.low %v325_v0, %v329_v1  ;;  %v389_v1 = vld [vmem:[%s3552_s27 + $0x3d0] sm:$0xff] }
 0x17f   : > { %1905 = vmatmul.mubr.bf16.vlgmr.msra.gmra.mrb[0].mxu0 %v2660_v16 }
 0x180   : > { %1914 = vmatpush1.bf16.xpose.msra.mxu0 %v2670_v30  ;;  %1945 = vmatprep.mubr.bf16.mxu0 %v2663_v23  ;;  %v469_v30 = vld [vmem:[%s3552_s27 + $0x650] sm:$0xff] }
 0x181   : > { %2069 = vmatmul.mubr.bf16.vlgmr.msra.gmra.mrb[0].mxu1 %v2660_v16  ;;  %1915 = vmatprep.subr.bf16.mxu0 %v2679_v21  ;;  %v2863_v16 = vcombine.high %v461_v10, %v465_v11  ;;  %v2734_v21 = vcombine.low %v333_v8, %v337_v9  ;;  %v270_v9 = vld [vmem:[%s3552_s27 + $0x18] sm:$0xff] }
 0x182   : > { %2078 = vmatpush1.bf16.xpose.msra.mxu1 %v2798_v20  ;;  %2109 = vmatprep.mubr.bf16.mxu1 %v2663_v23  ;;  %v473_v20 = vld [vmem:[%s3552_s27 + $0x670] sm:$0xff]  ;;  %v2743_v23 = vcombine.high %v341_v17, %v345_v18 }
 0x183   : > { %2079 = vmatprep.subr.bf16.mxu1 %v2807_v22  ;;  %v2862_v22 = vcombine.low %v461_v10, %v465_v11  ;;  %v2871_v14 = vcombine.high %v469_v30, %v473_v20  ;;  %v274_v10 = vld [vmem:[%s3552_s27 + $0x38] sm:$0xff] }
 0x184   : > { %v398_v11 = vld [vmem:[%s3552_s27 + $0x418] sm:$0xff] }
 0x188   : > { %1916 = vmatpush1.bf16.xpose.msra.mxu0 %v2678_v27  ;;  %v481_v27 = vld [vmem:[%s3552_s27 + $0x6b0] sm:$0xff] }
 0x189   : > { %1917 = vmatprep.subr.bf16.mxu0 %v2687_v29  ;;  %v2870_v29 = vcombine.low %v469_v30, %v473_v20  ;;  %v2879_v32 = vcombine.high %v477_v26, %v481_v27  ;;  %v282_v30 = vld [vmem:[%s3552_s27 + $0x78] sm:$0xff]  ;;  %v2662_v20 = vcombine.low %v3706_v19, %v3706_v19 }
 0x18a   : > { %2080 = vmatpush1.bf16.xpose.msra.mxu1 %v2806_v28  ;;  %v2742_v28 = vcombine.low %v341_v17, %v345_v18  ;;  %v278_v18 = vld [vmem:[%s3552_s27 + $0x58] sm:$0xff] }
 0x18b   : > { %2081 = vmatprep.subr.bf16.mxu1 %v2815_v31  ;;  %v2751_v31 = vcombine.high %v349_v24, %v353_v25  ;;  %v286_v19 = vld [vmem:[%s3552_s27 + $0x98] sm:$0xff] }
 0x190   : > { %1918 = vmatpush1.bf16.xpose.msra.mxu0 %v2686_v36  ;;  %v489_v36 = vld [vmem:[%s3552_s27 + $0x6f0] sm:$0xff] }
 0x191   : > { %1919 = vmatprep.subr.bf16.mxu0 %v2695_v38  ;;  %v2878_v38 = vcombine.low %v477_v26, %v481_v27  ;;  %v2887_v40 = vcombine.high %v485_v35, %v489_v36 }
 0x192   : > { %2082 = vmatpush1.bf16.xpose.msra.mxu1 %v2814_v37  ;;  %v2750_v37 = vcombine.low %v349_v24, %v353_v25  ;;  %v2681_v25 = vcombine.high %v278_v18, %v282_v30 }
 0x193   : > { %2083 = vmatprep.subr.bf16.mxu1 %v2823_v39  ;;  %v2759_v39 = vcombine.high %v357_v33, %v361_v34 }
 0x198   : > { %1920 = vmatpush1.bf16.xpose.msra.mxu0 %v2694_v44  ;;  %v497_v44 = vld [vmem:[%s3552_s27 + $0x730] sm:$0xff] }
 0x199   : > { %1921 = vmatprep.subr.bf16.mxu0 %v2703_v46  ;;  %v2886_v46 = vcombine.low %v485_v35, %v489_v36  ;;  %v2895_v48 = vcombine.high %v493_v43, %v497_v44  ;;  %v294_v36 = vld [vmem:[%s3552_s27 + $0xd8] sm:$0xff] }
 0x19a   : > { %2084 = vmatpush1.bf16.xpose.msra.mxu1 %v2822_v45  ;;  %v2758_v45 = vcombine.low %v357_v33, %v361_v34 }
 0x19b   : > { %2085 = vmatprep.subr.bf16.mxu1 %v2831_v47  ;;  %v2767_v47 = vcombine.high %v365_v41, %v369_v42 }
 0x1a0   : > { %1922 = vmatpush1.bf16.xpose.msra.mxu0 %v2702_v52  ;;  %v505_v52 = vld [vmem:[%s3552_s27 + $0x770] sm:$0xff] }
 0x1a1   : > { %1923 = vmatprep.subr.bf16.mxu0 %v2711_v54  ;;  %v2894_v54 = vcombine.low %v493_v43, %v497_v44  ;;  %v2903_v56 = vcombine.high %v501_v51, %v505_v52  ;;  %v302_v44 = vld [vmem:[%s3552_s27 + $0x118] sm:$0xff] }
 0x1a2   : > { %2086 = vmatpush1.bf16.xpose.msra.mxu1 %v2830_v53  ;;  %v2766_v53 = vcombine.low %v365_v41, %v369_v42 }
 0x1a3   : > { %2087 = vmatprep.subr.bf16.mxu1 %v2839_v55  ;;  %v2775_v55 = vcombine.high %v373_v49, %v377_v50 }
 0x1a8   : > { %1924 = vmatpush1.bf16.xpose.msra.mxu0 %v2710_v60  ;;  %v513_v60 = vld [vmem:[%s3552_s27 + $0x7b0] sm:$0xff] }
 0x1a9   : > { %1925 = vmatprep.subr.bf16.mxu0 %v2719_v62  ;;  %v2902_v62 = vcombine.low %v501_v51, %v505_v52  ;;  %v2911_v0 = vcombine.high %v509_v59, %v513_v60  ;;  %v310_v52 = vld [vmem:[%s3552_s27 + $0x158] sm:$0xff] }
 0x1aa   : > { %2088 = vmatpush1.bf16.xpose.msra.mxu1 %v2838_v61  ;;  %v2774_v61 = vcombine.low %v373_v49, %v377_v50 }
 0x1ab   : > { %2089 = vmatprep.subr.bf16.mxu1 %v2847_v63  ;;  %v2783_v63 = vcombine.high %v381_v57, %v385_v58 }
 0x1b0   : > { %1926 = vmatpush1.bf16.xpose.msra.mxu0 %v2718_v4  ;;  %v521_v4 = vld [vmem:[%s3552_s27 + $0x7f0] sm:$0xff] }
 0x1b1   : > { %1927 = vmatprep.subr.bf16.mxu0 %v2727_v6  ;;  %v2910_v6 = vcombine.low %v509_v59, %v513_v60  ;;  %v2919_v8 = vcombine.high %v517_v3, %v521_v4  ;;  %v318_v60 = vld [vmem:[%s3552_s27 + $0x198] sm:$0xff] }
 0x1b2   : > { %2090 = vmatpush1.bf16.xpose.msra.mxu1 %v2846_v5  ;;  %v2782_v5 = vcombine.low %v381_v57, %v385_v58 }
 0x1b3   : > { %2091 = vmatprep.subr.bf16.mxu1 %v2855_v7  ;;  %v2791_v7 = vcombine.high %v389_v1, %v393_v2 }
 0x1b8   : > { %1928 = vmatpush1.bf16.xpose.msra.mxu0 %v2726_v12  ;;  %v402_v12 = vld [vmem:[%s3552_s27 + $0x438] sm:$0xff] }
 0x1b9   : > { %1929 = vmatprep.subr.bf16.mxu0 %v2735_v15  ;;  %v2918_v15 = vcombine.low %v517_v3, %v521_v4  ;;  %v2801_v17 = vcombine.high %v398_v11, %v402_v12  ;;  %v2800_v24 = vcombine.low %v398_v11, %v402_v12  ;;  %v326_v4 = vld [vmem:[%s3552_s27 + $0x1d8] sm:$0xff] }
 0x1ba   : > { %2092 = vmatpush1.bf16.xpose.msra.mxu1 %v2854_v13  ;;  %v2790_v13 = vcombine.low %v389_v1, %v393_v2  ;;  %v334_v12 = vld [vmem:[%s3552_s27 + $0x218] sm:$0xff] }
 0x1bb   : > { %2093 = vmatprep.subr.bf16.mxu1 %v2863_v16  ;;  %v2673_v16 = vcombine.high %v270_v9, %v274_v10 }
 0x1c0   : > { %1930 = vmatpush1.bf16.xpose.msra.mxu0 %v2734_v21  ;;  %v406_v21 = vld [vmem:[%s3552_s27 + $0x458] sm:$0xff] }
 0x1c1   : > { %1931 = vmatprep.subr.bf16.mxu0 %v2743_v23  ;;  %v3776_v23 = vld [vmem:[#allocation2 + $0x18] sm:$0xff] }
 0x1c2   : > { %2094 = vmatpush1.bf16.xpose.msra.mxu1 %v2862_v22  ;;  %v410_v22 = vld [vmem:[%s3552_s27 + $0x478] sm:$0xff]  ;;  %v2665_v27 = vcombine.high %v3776_v23, %v3776_v23 }
 0x1c3   : > { %2095 = vmatprep.subr.bf16.mxu1 %v2871_v14  ;;  %v2672_v14 = vcombine.low %v270_v9, %v274_v10  ;;  %v2809_v26 = vcombine.high %v406_v21, %v410_v22  ;;  %v2808_v33 = vcombine.low %v406_v21, %v410_v22  ;;  %v342_v21 = vld [vmem:[%s3552_s27 + $0x258] sm:$0xff] }
 0x1c4   : > { %v346_v22 = vld [vmem:[%s3552_s27 + $0x278] sm:$0xff] }
 0x1c8   : > { %1932 = vmatpush1.bf16.xpose.msra.mxu0 %v2742_v28  ;;  %v290_v28 = vld [vmem:[%s3552_s27 + $0xb8] sm:$0xff] }
 0x1c9   : > { %1933 = vmatprep.subr.bf16.mxu0 %v2751_v31  ;;  %v418_v31 = vld [vmem:[%s3552_s27 + $0x4b8] sm:$0xff]  ;;  %v2689_v34 = vcombine.high %v286_v19, %v290_v28 }
 0x1ca   : > { %2096 = vmatpush1.bf16.xpose.msra.mxu1 %v2870_v29  ;;  %v414_v29 = vld [vmem:[%s3552_s27 + $0x498] sm:$0xff] }
 0x1cb   : > { %2097 = vmatprep.subr.bf16.mxu1 %v2879_v32  ;;  %v2680_v32 = vcombine.low %v278_v18, %v282_v30  ;;  %v2817_v35 = vcombine.high %v414_v29, %v418_v31  ;;  %v2816_v41 = vcombine.low %v414_v29, %v418_v31  ;;  %v354_v29 = vld [vmem:[%s3552_s27 + $0x2b8] sm:$0xff] }
 0x1cc   : > { %v478_v31 = vld [vmem:[%s3552_s27 + $0x698] sm:$0xff] }
 0x1d0   : > { %1934 = vmatpush1.bf16.xpose.msra.mxu0 %v2750_v37  ;;  %v298_v37 = vld [vmem:[%s3552_s27 + $0xf8] sm:$0xff] }
 0x1d1   : > { %1935 = vmatprep.subr.bf16.mxu0 %v2759_v39  ;;  %v426_v39 = vld [vmem:[%s3552_s27 + $0x4f8] sm:$0xff]  ;;  %v2697_v42 = vcombine.high %v294_v36, %v298_v37 }
 0x1d2   : > { %2098 = vmatpush1.bf16.xpose.msra.mxu1 %v2878_v38  ;;  %v422_v38 = vld [vmem:[%s3552_s27 + $0x4d8] sm:$0xff] }
 0x1d3   : > { %2099 = vmatprep.subr.bf16.mxu1 %v2887_v40  ;;  %v2688_v40 = vcombine.low %v286_v19, %v290_v28  ;;  %v2825_v43 = vcombine.high %v422_v38, %v426_v39  ;;  %v2824_v49 = vcombine.low %v422_v38, %v426_v39  ;;  %v350_v28 = vld [vmem:[%s3552_s27 + $0x298] sm:$0xff] }
 0x1d4   : > { %v362_v38 = vld [vmem:[%s3552_s27 + $0x2f8] sm:$0xff] }
 0x1d5   : > { %v486_v39 = vld [vmem:[%s3552_s27 + $0x6d8] sm:$0xff] }
 0x1d8   : > { %1936 = vmatpush1.bf16.xpose.msra.mxu0 %v2758_v45  ;;  %v306_v45 = vld [vmem:[%s3552_s27 + $0x138] sm:$0xff] }
 0x1d9   : > { %1937 = vmatprep.subr.bf16.mxu0 %v2767_v47  ;;  %v434_v47 = vld [vmem:[%s3552_s27 + $0x538] sm:$0xff]  ;;  %v2705_v50 = vcombine.high %v302_v44, %v306_v45 }
 0x1da   : > { %2100 = vmatpush1.bf16.xpose.msra.mxu1 %v2886_v46  ;;  %v430_v46 = vld [vmem:[%s3552_s27 + $0x518] sm:$0xff] }
 0x1db   : > { %2101 = vmatprep.subr.bf16.mxu1 %v2895_v48  ;;  %v2696_v48 = vcombine.low %v294_v36, %v298_v37  ;;  %v2833_v51 = vcombine.high %v430_v46, %v434_v47  ;;  %v2832_v57 = vcombine.low %v430_v46, %v434_v47  ;;  %v358_v37 = vld [vmem:[%s3552_s27 + $0x2d8] sm:$0xff] }
 0x1dc   : > { %v370_v46 = vld [vmem:[%s3552_s27 + $0x338] sm:$0xff] }
 0x1dd   : > { %v494_v47 = vld [vmem:[%s3552_s27 + $0x718] sm:$0xff] }
 0x1e0   : > { %1938 = vmatpush1.bf16.xpose.msra.mxu0 %v2766_v53  ;;  %v314_v53 = vld [vmem:[%s3552_s27 + $0x178] sm:$0xff] }
 0x1e1   : > { %1939 = vmatprep.subr.bf16.mxu0 %v2775_v55  ;;  %v442_v55 = vld [vmem:[%s3552_s27 + $0x578] sm:$0xff]  ;;  %v2713_v58 = vcombine.high %v310_v52, %v314_v53 }
 0x1e2   : > { %2102 = vmatpush1.bf16.xpose.msra.mxu1 %v2894_v54  ;;  %v438_v54 = vld [vmem:[%s3552_s27 + $0x558] sm:$0xff] }
 0x1e3   : > { %2103 = vmatprep.subr.bf16.mxu1 %v2903_v56  ;;  %v2704_v56 = vcombine.low %v302_v44, %v306_v45  ;;  %v2841_v59 = vcombine.high %v438_v54, %v442_v55  ;;  %v2840_v1 = vcombine.low %v438_v54, %v442_v55  ;;  %v366_v45 = vld [vmem:[%s3552_s27 + $0x318] sm:$0xff] }
 0x1e4   : > { %v378_v54 = vld [vmem:[%s3552_s27 + $0x378] sm:$0xff] }
 0x1e5   : > { %v502_v55 = vld [vmem:[%s3552_s27 + $0x758] sm:$0xff] }
 0x1e8   : > { %1940 = vmatpush1.bf16.xpose.msra.mxu0 %v2774_v61  ;;  %v322_v61 = vld [vmem:[%s3552_s27 + $0x1b8] sm:$0xff] }
 0x1e9   : > { %1941 = vmatprep.subr.bf16.mxu0 %v2783_v63  ;;  %v450_v63 = vld [vmem:[%s3552_s27 + $0x5b8] sm:$0xff]  ;;  %v2721_v2 = vcombine.high %v318_v60, %v322_v61 }
 0x1ea   : > { %2104 = vmatpush1.bf16.xpose.msra.mxu1 %v2902_v62  ;;  %v446_v62 = vld [vmem:[%s3552_s27 + $0x598] sm:$0xff] }
 0x1eb   : > { %2105 = vmatprep.subr.bf16.mxu1 %v2911_v0  ;;  %v2712_v0 = vcombine.low %v310_v52, %v314_v53  ;;  %v2849_v3 = vcombine.high %v446_v62, %v450_v63  ;;  %v2848_v9 = vcombine.low %v446_v62, %v450_v63  ;;  %v374_v53 = vld [vmem:[%s3552_s27 + $0x358] sm:$0xff] }
 0x1ec   : > { %v386_v62 = vld [vmem:[%s3552_s27 + $0x3b8] sm:$0xff] }
 0x1ed   : > { %v510_v63 = vld [vmem:[%s3552_s27 + $0x798] sm:$0xff] }
 0x1f0   : > { %1942 = vmatpush1.bf16.xpose.msra.mxu0 %v2782_v5  ;;  %v330_v5 = vld [vmem:[%s3552_s27 + $0x1f8] sm:$0xff] }
 0x1f1   : > { %1943 = vmatprep.subr.bf16.mxu0 %v2791_v7  ;;  %v458_v7 = vld [vmem:[%s3552_s27 + $0x5f8] sm:$0xff]  ;;  %v2729_v10 = vcombine.high %v326_v4, %v330_v5 }
 0x1f2   : > { %2106 = vmatpush1.bf16.xpose.msra.mxu1 %v2910_v6  ;;  %v454_v6 = vld [vmem:[%s3552_s27 + $0x5d8] sm:$0xff] }
 0x1f3   : > { %2107 = vmatprep.subr.bf16.mxu1 %v2919_v8  ;;  %v2720_v8 = vcombine.low %v318_v60, %v322_v61  ;;  %v2857_v11 = vcombine.high %v454_v6, %v458_v7  ;;  %v2856_v18 = vcombine.low %v454_v6, %v458_v7  ;;  %v382_v61 = vld [vmem:[%s3552_s27 + $0x398] sm:$0xff] }
 0x1f4   : > { %v394_v6 = vld [vmem:[%s3552_s27 + $0x3f8] sm:$0xff] }
 0x1f5   : > { %v518_v7 = vld [vmem:[%s3552_s27 + $0x7d8] sm:$0xff] }
 0x1f8   : > { %1944 = vmatpush1.bf16.xpose.msra.mxu0 %v2790_v13  ;;  %v338_v13 = vld [vmem:[%s3552_s27 + $0x238] sm:$0xff] }
 0x1f9   : > { %1954 = vmatprep.subr.bf16.mxu0 %v2673_v16  ;;  %v466_v16 = vld [vmem:[%s3552_s27 + $0x638] sm:$0xff]  ;;  %v2737_v30 = vcombine.high %v334_v12, %v338_v13 }
 0x1fa   : > { %2108 = vmatpush1.bf16.xpose.msra.mxu1 %v2918_v15  ;;  %v462_v15 = vld [vmem:[%s3552_s27 + $0x618] sm:$0xff] }
 0x1fb   : > { %2118 = vmatprep.subr.bf16.mxu1 %v2801_v17  ;;  %v2728_v17 = vcombine.low %v326_v4, %v330_v5  ;;  %v390_v5 = vld [vmem:[%s3552_s27 + $0x3d8] sm:$0xff] }
 0x1ff   : > { %1946 = vmatmul.mubr.bf16.vlgmr.msra.gmra.mrb[0].mxu0 %v2662_v20 }
 0x200   : > { %1955 = vmatpush1.bf16.xpose.msra.mxu0 %v2672_v14  ;;  %1986 = vmatprep.mubr.bf16.mxu0 %v2665_v27  ;;  %v470_v14 = vld [vmem:[%s3552_s27 + $0x658] sm:$0xff] }
 0x201   : > { %2110 = vmatmul.mubr.bf16.vlgmr.msra.gmra.mrb[0].mxu1 %v2662_v20  ;;  %1956 = vmatprep.subr.bf16.mxu0 %v2681_v25  ;;  %v2865_v20 = vcombine.high %v462_v15, %v466_v16  ;;  %v2736_v25 = vcombine.low %v334_v12, %v338_v13  ;;  %v2792_v13 = vcombine.low %v390_v5, %v394_v6 }
 0x202   : > { %2119 = vmatpush1.bf16.xpose.msra.mxu1 %v2800_v24  ;;  %2150 = vmatprep.mubr.bf16.mxu1 %v2665_v27  ;;  %v474_v24 = vld [vmem:[%s3552_s27 + $0x678] sm:$0xff]  ;;  %v2745_v27 = vcombine.high %v342_v21, %v346_v22 }
 0x203   : > { %2120 = vmatprep.subr.bf16.mxu1 %v2809_v26  ;;  %v2864_v26 = vcombine.low %v462_v15, %v466_v16  ;;  %v2873_v19 = vcombine.high %v470_v14, %v474_v24  ;;  %v3119_v16 = vld [vmem:[%s3784_s9 + $0x40] sm:$0xff]  }
 0x208   : > { %1957 = vmatpush1.bf16.xpose.msra.mxu0 %v2680_v32  ;;  %v482_v32 = vld [vmem:[%s3552_s27 + $0x6b8] sm:$0xff] }
 0x209   : > { %1958 = vmatprep.subr.bf16.mxu0 %v2689_v34  ;;  %v2872_v34 = vcombine.low %v470_v14, %v474_v24  ;;  %v2881_v36 = vcombine.high %v478_v31, %v482_v32  ;;  %v3125_v14 = vld [vmem:[%s3784_s9 + $0x8] sm:$0xff]  }
 0x20a   : > { %2121 = vmatpush1.bf16.xpose.msra.mxu1 %v2808_v33  ;;  %v2744_v33 = vcombine.low %v342_v21, %v346_v22  ;;  %v3123_v21 = vld [vmem:[%s3784_s9 + $0x48] sm:$0xff]  }
 0x20b   : > { %2122 = vmatprep.subr.bf16.mxu1 %v2817_v35  ;;  %v2753_v35 = vcombine.high %v350_v28, %v354_v29  ;;  %v3124_v22 = vld [vmem:[%s3784_s9 + $0xc8] sm:$0xff]  }
 0x20c   : > { %v3126_v24 = vld [vmem:[%s3784_s9 + $0x88] sm:$0xff]  }
 0x210   : > { %1959 = vmatpush1.bf16.xpose.msra.mxu0 %v2688_v40  ;;  %v490_v40 = vld [vmem:[%s3552_s27 + $0x6f8] sm:$0xff] }
 0x211   : > { %1960 = vmatprep.subr.bf16.mxu0 %v2697_v42  ;;  %v2880_v42 = vcombine.low %v478_v31, %v482_v32  ;;  %v2889_v44 = vcombine.high %v486_v39, %v490_v40  ;;  %v3134_v31 = vld [vmem:[%s3784_s9 + $0x98] sm:$0xff]   ;;  %v3135_v32 = vld [vmem:[%s3784_s9 + $0x60] sm:$0xff]  }
 0x212   : > { %2123 = vmatpush1.bf16.xpose.msra.mxu1 %v2816_v41  ;;  %v2752_v41 = vcombine.low %v350_v28, %v354_v29  ;;  %v3132_v28 = vld [vmem:[%s3784_s9 + $0xd8] sm:$0xff]  }
 0x213   : > { %2124 = vmatprep.subr.bf16.mxu1 %v2825_v43  ;;  %v2761_v43 = vcombine.high %v358_v37, %v362_v38  ;;  %v3133_v29 = vld [vmem:[%s3784_s9 + $0x18] sm:$0xff]  }
 0x218   : > { %1961 = vmatpush1.bf16.xpose.msra.mxu0 %v2696_v48  ;;  %v498_v48 = vld [vmem:[%s3552_s27 + $0x738] sm:$0xff] }
 0x219   : > { %1962 = vmatprep.subr.bf16.mxu0 %v2705_v50  ;;  %v2888_v50 = vcombine.low %v486_v39, %v490_v40  ;;  %v2897_v52 = vcombine.high %v494_v47, %v498_v48  ;;  %v3142_v39 = vld [vmem:[%s3784_s9 + $0xa8] sm:$0xff]   ;;  %v3143_v40 = vld [vmem:[%s3784_s9 + $0x70] sm:$0xff]  }
 0x21a   : > { %2125 = vmatpush1.bf16.xpose.msra.mxu1 %v2824_v49  ;;  %v2760_v49 = vcombine.low %v358_v37, %v362_v38  ;;  %v3140_v37 = vld [vmem:[%s3784_s9 + $0xe8] sm:$0xff]  }
 0x21b   : > { %2126 = vmatprep.subr.bf16.mxu1 %v2833_v51  ;;  %v2769_v51 = vcombine.high %v366_v45, %v370_v46  ;;  %v3141_v38 = vld [vmem:[%s3784_s9 + $0x28] sm:$0xff]  }
 0x220   : > { %1963 = vmatpush1.bf16.xpose.msra.mxu0 %v2704_v56  ;;  %v506_v56 = vld [vmem:[%s3552_s27 + $0x778] sm:$0xff] }
 0x221   : > { %1964 = vmatprep.subr.bf16.mxu0 %v2713_v58  ;;  %v2896_v58 = vcombine.low %v494_v47, %v498_v48  ;;  %v2905_v60 = vcombine.high %v502_v55, %v506_v56  ;;  %v3150_v47 = vld [vmem:[%s3784_s9 + $0xb8] sm:$0xff]  }
 0x222   : > { %2127 = vmatpush1.bf16.xpose.msra.mxu1 %v2832_v57  ;;  %v2768_v57 = vcombine.low %v366_v45, %v370_v46  ;;  %v3148_v45 = vld [vmem:[%s3784_s9 + $0xf8] sm:$0xff]  }
 0x223   : > { %2128 = vmatprep.subr.bf16.mxu1 %v2841_v59  ;;  %v2777_v59 = vcombine.high %v374_v53, %v378_v54  ;;  %v3149_v46 = vld [vmem:[%s3784_s9 + $0x38] sm:$0xff]  }
 0x228   : > { %1965 = vmatpush1.bf16.xpose.msra.mxu0 %v2712_v0  ;;  %v514_v0 = vld [vmem:[%s3552_s27 + $0x7b8] sm:$0xff] }
 0x229   : > { %1966 = vmatprep.subr.bf16.mxu0 %v2721_v2  ;;  %v2904_v2 = vcombine.low %v502_v55, %v506_v56  ;;  %v2913_v4 = vcombine.high %v510_v63, %v514_v0 }
 0x22a   : > { %2129 = vmatpush1.bf16.xpose.msra.mxu1 %v2840_v1  ;;  %v2776_v1 = vcombine.low %v374_v53, %v378_v54 }
 0x22b   : > { %2130 = vmatprep.subr.bf16.mxu1 %v2849_v3  ;;  %v2785_v3 = vcombine.high %v382_v61, %v386_v62 }
 0x230   : > { %1967 = vmatpush1.bf16.xpose.msra.mxu0 %v2720_v8  ;;  %v522_v8 = vld [vmem:[%s3552_s27 + $0x7f8] sm:$0xff] }
 0x231   : > { %1968 = vmatprep.subr.bf16.mxu0 %v2729_v10  ;;  %v2912_v10 = vcombine.low %v510_v63, %v514_v0  ;;  %v2921_v12 = vcombine.high %v518_v7, %v522_v8  ;;  %v2920_v15 = vcombine.low %v518_v7, %v522_v8 }
 0x232   : > { %2131 = vmatpush1.bf16.xpose.msra.mxu1 %v2848_v9  ;;  %v2784_v9 = vcombine.low %v382_v61, %v386_v62 }
 0x233   : > { %2132 = vmatprep.subr.bf16.mxu1 %v2857_v11  ;;  %v2793_v11 = vcombine.high %v390_v5, %v394_v6 }
 0x238   : > { %1969 = vmatpush1.bf16.xpose.msra.mxu0 %v2728_v17  ;;  %v3120_v17 = vld [vmem:[%s3784_s9 + $0xc0] sm:$0xff]  }
 0x239   : > { %1970 = vmatprep.subr.bf16.mxu0 %v2737_v30  ;;  %v3121_v30 = vld [vmem:[%s3784_s9] sm:$0xff]  }
 0x23a   : > { %2133 = vmatpush1.bf16.xpose.msra.mxu1 %v2856_v18  ;;  %v2664_v18 = vcombine.low %v3776_v23, %v3776_v23  ;;  %v3128_v23 = vld [vmem:[%s3784_s9 + $0xd0] sm:$0xff]  }
 0x23b   : > { %2134 = vmatprep.subr.bf16.mxu1 %v2865_v20  ;;  %v3122_v20 = vld [vmem:[%s3784_s9 + $0x80] sm:$0xff]  }
 0x240   : > { %1971 = vmatpush1.bf16.xpose.msra.mxu0 %v2736_v25  ;;  %v3127_v25 = vld [vmem:[%s3784_s9 + $0x50] sm:$0xff]  }
 0x241   : > { %1972 = vmatprep.subr.bf16.mxu0 %v2745_v27  ;;  %v3130_v27 = vld [vmem:[%s3784_s9 + $0x90] sm:$0xff]  }
 0x242   : > { %2135 = vmatpush1.bf16.xpose.msra.mxu1 %v2864_v26  ;;  %v3129_v26 = vld [vmem:[%s3784_s9 + $0x10] sm:$0xff]  }
 0x243   : > { %2136 = vmatprep.subr.bf16.mxu1 %v2873_v19  ;;  %v3131_v19 = vld [vmem:[%s3784_s9 + $0x58] sm:$0xff]  }
 0x248   : > { %1973 = vmatpush1.bf16.xpose.msra.mxu0 %v2744_v33  ;;  %v3136_v33 = vld [vmem:[%s3784_s9 + $0xe0] sm:$0xff]  }
 0x249   : > { %1974 = vmatprep.subr.bf16.mxu0 %v2753_v35  ;;  %v3138_v35 = vld [vmem:[%s3784_s9 + $0xa0] sm:$0xff]  }
 0x24a   : > { %2137 = vmatpush1.bf16.xpose.msra.mxu1 %v2872_v34  ;;  %v3137_v34 = vld [vmem:[%s3784_s9 + $0x20] sm:$0xff]  }
 0x24b   : > { %2138 = vmatprep.subr.bf16.mxu1 %v2881_v36  ;;  %v3139_v36 = vld [vmem:[%s3784_s9 + $0x68] sm:$0xff]  }
 0x250   : > { %1975 = vmatpush1.bf16.xpose.msra.mxu0 %v2752_v41  ;;  %v3144_v41 = vld [vmem:[%s3784_s9 + $0xf0] sm:$0xff]  }
 0x251   : > { %1976 = vmatprep.subr.bf16.mxu0 %v2761_v43  ;;  %v3146_v43 = vld [vmem:[%s3784_s9 + $0xb0] sm:$0xff]  }
 0x252   : > { %2139 = vmatpush1.bf16.xpose.msra.mxu1 %v2880_v42  ;;  %v3145_v42 = vld [vmem:[%s3784_s9 + $0x30] sm:$0xff]  }
 0x253   : > { %2140 = vmatprep.subr.bf16.mxu1 %v2889_v44  ;;  %v3147_v44 = vld [vmem:[%s3784_s9 + $0x78] sm:$0xff]  }
 0x258   : > { %1977 = vmatpush1.bf16.xpose.msra.mxu0 %v2760_v49 }
 0x259   : > { %1978 = vmatprep.subr.bf16.mxu0 %v2769_v51 }
 0x25a   : > { %2141 = vmatpush1.bf16.xpose.msra.mxu1 %v2888_v50 }
 0x25b   : > { %2142 = vmatprep.subr.bf16.mxu1 %v2897_v52 }
 0x260   : > { %1979 = vmatpush1.bf16.xpose.msra.mxu0 %v2768_v57 }
 0x261   : > { %1980 = vmatprep.subr.bf16.mxu0 %v2777_v59 }
 0x262   : > { %2143 = vmatpush1.bf16.xpose.msra.mxu1 %v2896_v58 }
 0x263   : > { %2144 = vmatprep.subr.bf16.mxu1 %v2905_v60 }
 0x268   : > { %1981 = vmatpush1.bf16.xpose.msra.mxu0 %v2776_v1 }
 0x269   : > { %1982 = vmatprep.subr.bf16.mxu0 %v2785_v3 }
 0x26a   : > { %2145 = vmatpush1.bf16.xpose.msra.mxu1 %v2904_v2 }
 0x26b   : > { %2146 = vmatprep.subr.bf16.mxu1 %v2913_v4 }
 0x270   : > { %1983 = vmatpush1.bf16.xpose.msra.mxu0 %v2784_v9 }
 0x271   : > { %1984 = vmatprep.subr.bf16.mxu0 %v2793_v11 }
 0x272   : > { %2147 = vmatpush1.bf16.xpose.msra.mxu1 %v2912_v10 }
 0x273   : > { %2148 = vmatprep.subr.bf16.mxu1 %v2921_v12 }
 0x278   : > { %1985 = vmatpush1.bf16.xpose.msra.mxu0 %v2792_v13 }
 0x279   : > { %2961 = vmatprep.subr.bf16.mxu0 %v3119_v16 }
 0x27a   : > { %2149 = vmatpush1.bf16.xpose.msra.mxu1 %v2920_v15 }
 0x27b   : > { %2983 = vmatprep.subr.bf16.mxu1 %v3120_v17 }
 0x27f   : > { %1987 = vmatmul.mubr.bf16.vlgmr.msra.gmra.mrb[0].mxu0 %v2664_v18 }
 0x280   : > { %2962 = vmatpush3.bf16.msra.mxu0 %v3121_v30 }
 0x281   : > { %2151 = vmatmul.mubr.bf16.vlgmr.msra.gmra.mrb[0].mxu1 %v2664_v18  ;;  %2963 = vmatprep.subr.bf16.mxu0 %v3123_v21 }
 0x282   : > { %2984 = vmatpush3.bf16.msra.mxu1 %v3122_v20 }
 0x283   : > { %2985 = vmatprep.subr.bf16.mxu1 %v3124_v22 }
 0x284   : > { %2964 = vmatpush3.bf16.msra.mxu0 %v3125_v14 }
 0x285   : > { %2965 = vmatprep.subr.bf16.mxu0 %v3127_v25 }
 0x286   : > { %2986 = vmatpush3.bf16.msra.mxu1 %v3126_v24 }
 0x287   : > { %2987 = vmatprep.subr.bf16.mxu1 %v3128_v23 }
 0x288   : > { %2966 = vmatpush3.bf16.msra.mxu0 %v3129_v26 }
 0x289   : > { %2967 = vmatprep.subr.bf16.mxu0 %v3131_v19 }
 0x28a   : > { %2988 = vmatpush3.bf16.msra.mxu1 %v3130_v27 }
 0x28b   : > { %2989 = vmatprep.subr.bf16.mxu1 %v3132_v28 }
 0x28c   : > { %2968 = vmatpush3.bf16.msra.mxu0 %v3133_v29 }
 0x28d   : > { %2969 = vmatprep.subr.bf16.mxu0 %v3135_v32 }
 0x28e   : > { %2990 = vmatpush3.bf16.msra.mxu1 %v3134_v31 }
 0x28f   : > { %2991 = vmatprep.subr.bf16.mxu1 %v3136_v33 }
 0x290   : > { %2970 = vmatpush3.bf16.msra.mxu0 %v3137_v34 }
 0x291   : > { %2971 = vmatprep.subr.bf16.mxu0 %v3139_v36 }
 0x292   : > { %2992 = vmatpush3.bf16.msra.mxu1 %v3138_v35 }
 0x293   : > { %2993 = vmatprep.subr.bf16.mxu1 %v3140_v37 }
 0x294   : > { %2972 = vmatpush3.bf16.msra.mxu0 %v3141_v38 }
 0x295   : > { %2973 = vmatprep.subr.bf16.mxu0 %v3143_v40 }
 0x296   : > { %2994 = vmatpush3.bf16.msra.mxu1 %v3142_v39 }
 0x297   : > { %2995 = vmatprep.subr.bf16.mxu1 %v3144_v41 }
 0x298   : > { %2974 = vmatpush3.bf16.msra.mxu0 %v3145_v42 }
 0x299   : > { %2975 = vmatprep.subr.bf16.mxu0 %v3147_v44 }
 0x29a   : > { %2996 = vmatpush3.bf16.msra.mxu1 %v3146_v43 }
 0x29b   : > { %2997 = vmatprep.subr.bf16.mxu1 %v3148_v45 }
 0x29c   : > { %2976 = vmatpush3.bf16.msra.mxu0 %v3149_v46 }
 0x29e   : > { %2998 = vmatpush3.bf16.msra.mxu1 %v3150_v47 }
 0x352   : > { %v1988_v48 = vpop.f32.mrb[0].mxu0 }
 0x353   : > { %v2159_v49 = vmax.f32 %v1988_v48, 0.0  ;;  %v1990_v51 = vpop.f32.mrb[1].mxu0 }
 0x354   : > { %v2152_v50 = vpop.f32.mrb[0].mxu1  ;;  %v2160_v53 = vmax.f32 %v1990_v51, 0.0  ;;  %v1992_v55 = vpop.f32.mrb[2].mxu0 }
 0x355   : > { %v2161_v52 = vmax.f32 %v2152_v50, 0.0  ;;  %v2154_v54 = vpop.f32.mrb[1].mxu1  ;;  %v1993_v58 = vpop.f32.mrb[3].mxu0  ;;  %v2163_v61 = vpack.c.bf16 %v2159_v49, %v2159_v49 }
 0x356   : > { %v2162_v56 = vmax.f32 %v2154_v54, 0.0  ;;  %v2156_v57 = vpop.f32.mrb[2].mxu1  ;;  %v2164_v59 = vpack.c.bf16 %v2160_v53, %v2160_v53 }
 0x357   : > { %v2157_v60 = vpop.f32.mrb[3].mxu1  ;;  %v2165_v63 = vpack.c.bf16 %v2161_v52, %v2161_v52 }
 0x358   : > { %v2166_v62 = vpack.c.bf16 %v2162_v56, %v2162_v56  ;;  %2455 = vmatprep.mubr.bf16.mxu0 %v2164_v59 }
 0x359   : > { %2456 = vmatmul.mubr.bf16.vlgmr.msra.gmra.mrb[4].mxu0 %v2163_v61 }
 0x35a   : > { %2495 = vmatprep.mubr.bf16.mxu1 %v2166_v62 }
 0x35b   : > { %2496 = vmatmul.mubr.bf16.vlgmr.msra.gmra.mrb[4].mxu1 %v2165_v63 }
 0x42c   : > { %v2977_v0 = vpop.f32.mrb[4].mxu0 }
 0x42d   : > { %v2978_v2 = vpop.f32.mrb[5].mxu0 }
 0x42e   : > { %v2999_v1 = vpop.f32.mrb[4].mxu1  ;;  %v2979_v3 = vadd.f32 %v2978_v2, %v2977_v0  ;;  %v2980_v5 = vpop.f32.mrb[6].mxu0 }
 0x42f   : > { %v3000_v4 = vpop.f32.mrb[5].mxu1  ;;  %v2981_v8 = vpop.f32.mrb[7].mxu0 }
 0x430   : > { %v3001_v6 = vadd.f32 %v3000_v4, %v2999_v1  ;;  %v3002_v7 = vpop.f32.mrb[6].mxu1 }
 0x431   : > { %v3003_v9 = vpop.f32.mrb[7].mxu1 }
 0x432   : > { %v2498_v10 = vadd.f32 %v3001_v6, %v2979_v3 }
 0x434   : > { %2507 = vst [vmem:[%s257_s25] sm:$0xff] %v2498_v10 }
 0x435   : > { %3252 = shalt.err (!%p3249_p6)
}
 0x436   : > { %s3253_s2 = scalar_lea.hbm %s3878_s21, 128  ;;  %s3257_s22 = scalar_lea.hbm %s3930_s3, 256 }
 0x437   : > { %p3254_p12 = scmp.ne.s32.totalorder %s3878_s21, %s3253_s2  ;;  %p3258_p5 = scmp.lt.u32.totalorder %s3878_s21, %s3930_s3 }
 0x438   : > { %p3259_p11 = scmp.lt.u32.totalorder %s3257_s22, %s3253_s2  ;;  %p3261_p8 = scmp.lt.u32.totalorder %s3253_s2, %s3878_s21 }
 0x439   : > { %p3255_p10 = pnand %p3254_p12, %p3949_p13 }
 0x43a   : > { %p3260_p0 = por %p3259_p11, %p3258_p5 }
 0x43b   : > { %p3256_p9 = pneg %p3255_p10 }
 0x43c   : > { %p3262_p4 = por %p3261_p8, %p3260_p0 }
 0x43e   : > { %p3263_p7 = pnand %p3262_p4, %p3256_p9 }
 0x440   : > { %3266 = shalt.err (!%p3263_p7)
}
 0x441   : > { %3037 = dma.vmem_to_hbm [thread:$0]  (%p3949_p13), %s3880_s8, 128, %s3878_s21, %s2516_s20  }
 0x442 PF: > { %s2541_s7 = sand.u32 1, %s3305_s12   ;;  %p3950_p1 = scmp.ne.s32.totalorder %s3941_s4, 0 }
 0x443   : > { %p3951_p3 = scmp.ge.s32.totalorder %s3325_s17, 2  ;;  %s2542_s9 = scalar_lea.sflag [#allocation4], %s2541_s7 }
 0x445   : > { %p3051_p2 = pnand %p3951_p3, %p3950_p1 }
 0x447   : > { %3300 = dma.done.wait (!%p3051_p2), %s2542_s9, 128  }
 0x448   : > { %3302 = vsyncadd (!%p3051_p2), %s2542_s9, 4294967168  ;;  %s20_s17 = sadd.s32 1, %s3325_s17   ;;  %s3952_s12 = smov %s3309_s13 }
 0x449   : > { %p17_p6 = scmp.ge.s32.totalorder %s20_s17, 4   ;;  %s3953_s13 = smov %s3313_s14 }
 0x44a   : > { %s3954_s14 = smov %s3403_s24  ;;  %s3955_s15 = smov %s3321_s16 }
 0x44b   : > { %s3956_s16 = smov %s3958_s18  ;;  %19 = sbr.rel (!%p17_p6) target bundleno = 10 (0xa), region = 101 }
 0x452   :  { %2547 = vsyncpa [#allocation3], 1 }
 0x453   :  { %2549 = vsyncpa [#allocation3 + $0x1], 1 }
 0x454   :  { %2550 = vsyncpa [#allocation6], 1 }
 0x455   :  { %2552 = vsyncpa [#allocation6 + $0x1], 1 }
 0x456   :  { %2553 = vsyncpa [#allocation4], 1 }
 0x457   :  { %2555 = vsyncpa [#allocation4 + $0x1], 1 }

</bundles_post_ra>
